<compile_context>
chip_gen: v7x
topology: tpu7x:2x2x1
jax: 0.10.0
libtpu: 0.0.40
codegen_flags: <defaults>
</compile_context>

<pallas_src>
import jax
import jax.numpy as jnp
import numpy as np
from jax import lax
from jax.experimental import pallas as pl
from jax.experimental.pallas import tpu as pltpu


def make_attention_kernel(heads, dim_head, batch_block):
    hdh = heads * dim_head

    def kernel(x_ref, wqkv_ref, o_ref):
        # x_ref:    (bb, C, N)       batch block, channels-major (native NCHW slab), bf16
        # wqkv_ref: (3*H*Dh, C)      fused q/k/v projection, scale folded into q rows, bf16
        # o_ref:    (bb, N, H*Dh)    concatenated per-head attention output, bf16
        w = wqkv_ref[...]                                   # (3*H*Dh, C) bf16

        for bi in range(batch_block):                       # unrolled (static) batch loop
            xT = x_ref[bi]                                  # (C, N) bf16

            # Fused QKV^T = W @ x^T on the MXU (bf16 in, f32 accumulate).
            qkvT = lax.dot_general(
                w, xT, (((1,), (0,)), ((), ())),
                preferred_element_type=jnp.float32)          # (3*H*Dh, N) f32
            qkvT = qkvT.astype(jnp.bfloat16)

            for h in range(heads):                           # short unrolled head loop
                # 32-row sublane slices (aligned, no lane relayout).
                qT = qkvT[h * dim_head:(h + 1) * dim_head, :]                      # (Dh, N)
                kT = qkvT[hdh + h * dim_head: hdh + (h + 1) * dim_head, :]         # (Dh, N)
                vT = qkvT[2 * hdh + h * dim_head: 2 * hdh + (h + 1) * dim_head, :]  # (Dh, N)

                # sim[i, j] = sum_d qT[d, i] * kT[d, j]  (contract on the row axis)
                sim = lax.dot_general(
                    qT, kT, (((0,), (0,)), ((), ())),
                    preferred_element_type=jnp.float32)      # (N, N) f32

                # softmax over j (f32 math, EUP reciprocal)
                sim = sim - jnp.max(sim, axis=-1, keepdims=True)
                e = jnp.exp(sim)
                attn = e * pl.reciprocal(
                    jnp.sum(e, axis=-1, keepdims=True), approx=True)

                # out[i, d] = sum_j attn[i, j] * vT[d, j]
                out_h = lax.dot_general(
                    attn.astype(jnp.bfloat16), vT, (((1,), (1,)), ((), ())),
                    preferred_element_type=jnp.float32)      # (N, Dh) f32

                # Store this head immediately (frees vregs; no trailing concat).
                # The HBM writeback of the full (N, 128) block stays lane-dense.
                o_ref[bi, :, h * dim_head:(h + 1) * dim_head] = out_h.astype(o_ref.dtype)

    return kernel


def _tensorcores_per_chip():
    """Host-side heuristic: 2 TensorCores on v7x-class parts, 1 on v5e/v6e."""
    try:
        kind = jax.devices()[0].device_kind.lower()
    except Exception:
        return 1
    return 2 if ("v7" in kind or "7x" in kind) else 1


def attention_forward(x_nchw, w_qkv, w_out, b_out, heads, dim_head):
    """x_nchw: (B, C, H, W); w_qkv: (3*heads*dim_head, C, 1, 1);
    w_out: (C, heads*dim_head, 1, 1); b_out: (C,)"""
    b, c, h, w = x_nchw.shape
    n = h * w
    hdh = heads * dim_head
    scale = float(dim_head) ** (-0.5)

    # Native layouts for the transposed kernel (no wrapper transposes needed).
    x_bcn = x_nchw.reshape(b, c, n).astype(jnp.bfloat16)            # (B, C, N)

    wqkv_2d = w_qkv[:, :, 0, 0]                                     # (3*H*Dh, C)
    scale_rows = jnp.concatenate([jnp.full((hdh,), scale, jnp.float32),
                                  jnp.ones((2 * hdh,), jnp.float32)])
    wqkv_2d = (wqkv_2d * scale_rows[:, None]).astype(jnp.bfloat16)  # fold q scale in

    # Batch blocking: single fused program on single-TC parts (v5e/v6e),
    # one batch element per program ("parallel") on 2-TC parts (v7x).
    cores = _tensorcores_per_chip()
    bb = 1 if (cores > 1 and b > 1) else b
    if b % bb != 0:
        bb = 1
    grid = (b // bb,)

    # Advisory cost hint so XLA schedules/overlaps around this tiny custom call.
    flops = b * (2 * n * c * (3 * hdh) + heads * 2 * (2 * n * n * dim_head))
    transcendentals = b * heads * (n * n + n)
    bytes_accessed = x_bcn.size * 2 + wqkv_2d.size * 2 + b * n * hdh * 2
    cost = pl.CostEstimate(flops=flops, transcendentals=transcendentals,
                           bytes_accessed=bytes_accessed)

    head_out = pl.pallas_call(
        make_attention_kernel(heads, dim_head, bb),
        out_shape=jax.ShapeDtypeStruct((b, n, hdh), jnp.bfloat16),
        grid_spec=pltpu.PrefetchScalarGridSpec(
            num_scalar_prefetch=0,
            grid=grid,
            in_specs=[
                pl.BlockSpec((bb, c, n), lambda bi: (bi, 0, 0)),
                pl.BlockSpec((3 * hdh, c), lambda bi: (0, 0)),
            ],
            out_specs=pl.BlockSpec((bb, n, hdh), lambda bi: (bi, 0, 0)),
        ),
        compiler_params=pltpu.CompilerParams(
            dimension_semantics=("parallel",)),
        cost_estimate=cost,
    )(x_bcn, wqkv_2d)

    # Tiny 1x1 out-projection + bias in XLA (C=8 output would force masked HBM stores).
    w_out_2d = w_out[:, :, 0, 0]                                    # (C, H*Dh)
    y_bnc = jnp.einsum('bnd,cd->bnc', head_out.astype(jnp.float32), w_out_2d)
    y_bnc = y_bnc + b_out[None, None, :]
    return jnp.transpose(y_bnc, (0, 2, 1)).reshape(b, c, h, w)      # back to NCHW


def reference_attention(x, w_qkv, w_out, b_out, heads, dim_head):
    b, c, h, w = x.shape
    scale = float(dim_head) ** (-0.5)
    qkv = jnp.einsum('oc,bchw->bohw', w_qkv[:, :, 0, 0], x)
    q, k, v = jnp.split(qkv, 3, axis=1)
    rearr = lambda t: t.reshape(b, heads, dim_head, h * w)
    q, k, v = map(rearr, (q, k, v))
    q = q * scale
    sim = jnp.einsum('bhdi,bhdj->bhij', q, k)
    sim = sim - jnp.max(sim, axis=-1, keepdims=True)
    attn = jax.nn.softmax(sim, axis=-1)
    out = jnp.einsum('bhij,bhdj->bhid', attn, v)              # (b, heads, n, d)
    out = out.reshape(b, heads, h, w, dim_head)
    out = jnp.transpose(out, (0, 1, 4, 2, 3)).reshape(b, heads * dim_head, h, w)
    y = jnp.einsum('oi,bihw->bohw', w_out[:, :, 0, 0], out)
    return y + b_out[None, :, None, None]


if __name__ == "__main__":
    # small shapes consistent with the module's mid_attn block
    B, DIM, H, W = 2, 8, 8, 8
    HEADS, DIM_HEAD = 4, 32
    HIDDEN = HEADS * DIM_HEAD

    key = jax.random.PRNGKey(0)
    kx, kq, ko, kb = jax.random.split(key, 4)
    x = jax.random.normal(kx, (B, DIM, H, W), dtype=jnp.float32)
    w_qkv = 0.05 * jax.random.normal(kq, (3 * HIDDEN, DIM, 1, 1), dtype=jnp.float32)
    w_out = 0.05 * jax.random.normal(ko, (DIM, HIDDEN, 1, 1), dtype=jnp.float32)
    b_out = 0.05 * jax.random.normal(kb, (DIM,), dtype=jnp.float32)

    y = attention_forward(x, w_qkv, w_out, b_out, HEADS, DIM_HEAD)
    y = jax.block_until_ready(y)

    y_ref = reference_attention(x, w_qkv, w_out, b_out, HEADS, DIM_HEAD)
    # bf16 MXU operands / bf16 kernel output + approx reciprocal -> loosened tolerance
    np.testing.assert_allclose(np.asarray(y), np.asarray(y_ref), rtol=2e-2, atol=2e-2)

    print("KERNEL_OK")
</pallas_src>

<mosaic_0001>
module attributes {stable_mosaic.version = 11 : i64} {
  func.func @kernel(%arg0: i32, %arg1: memref<2x8x64xbf16, #tpu.memory_space<vmem>>, %arg2: memref<384x8xbf16, #tpu.memory_space<vmem>>, %arg3: memref<2x64x128xbf16, #tpu.memory_space<vmem>>) attributes {dimension_semantics = [#tpu.dimension_semantics<parallel>], iteration_bounds = array<i64: 1>, scalar_prefetch = 0 : i64, scratch_operands = 0 : i64, tpu.core_type = #tpu.core_type<tc>, window_params = [{transform_indices = @transform_0, window_bounds = array<i64: 2, 8, 64>}, {pipeline_mode = #tpu.pipeline_mode<synchronous>, transform_indices = @transform_1, window_bounds = array<i64: 384, 8>}, {transform_indices = @transform_2, window_bounds = array<i64: 2, 64, 128>}]} {
    %c0 = arith.constant 0 : index
    %c0_0 = arith.constant 0 : index
    %0 = vector.load %arg2[%c0, %c0_0] : memref<384x8xbf16, #tpu.memory_space<vmem>>, vector<384x8xbf16>
    %c0_1 = arith.constant 0 : index
    %c0_2 = arith.constant 0 : index
    %c0_3 = arith.constant 0 : index
    %1 = vector.load %arg1[%c0_1, %c0_2, %c0_3] : memref<2x8x64xbf16, #tpu.memory_space<vmem>>, vector<1x8x64xbf16>
    %2 = vector.shape_cast %1 : vector<1x8x64xbf16> to vector<8x64xbf16>
    %cst = arith.constant dense<0.000000e+00> : vector<384x64xf32>
    %3 = tpu.matmul %0, %2, %cst {dimension_numbers = #tpu.dot_dimension_numbers<[1], [0], [0], [1], [0, 0, 1, 1], [], []>} : vector<384x8xbf16>, vector<8x64xbf16>, vector<384x64xf32> -> vector<384x64xf32>
    %4 = arith.truncf %3 : vector<384x64xf32> to vector<384x64xbf16>
    %5 = vector.extract_strided_slice %4 {offsets = [0, 0], sizes = [32, 64], strides = [1, 1]} : vector<384x64xbf16> to vector<32x64xbf16>
    %6 = vector.extract_strided_slice %4 {offsets = [128, 0], sizes = [32, 64], strides = [1, 1]} : vector<384x64xbf16> to vector<32x64xbf16>
    %7 = vector.extract_strided_slice %4 {offsets = [256, 0], sizes = [32, 64], strides = [1, 1]} : vector<384x64xbf16> to vector<32x64xbf16>
    %cst_4 = arith.constant dense<0.000000e+00> : vector<64x64xf32>
    %8 = tpu.matmul %5, %6, %cst_4 {dimension_numbers = #tpu.dot_dimension_numbers<[0], [0], [1], [1], [0, 1, 1, 1], [], []>} : vector<32x64xbf16>, vector<32x64xbf16>, vector<64x64xf32> -> vector<64x64xf32>
    %cst_5 = arith.constant dense<0xFF800000> : vector<64xf32>
    %9 = vector.multi_reduction <maximumf>, %8, %cst_5 [1] : vector<64x64xf32> to vector<64xf32>
    %10 = vector.shape_cast %9 : vector<64xf32> to vector<64x1xf32>
    %11 = vector.broadcast %10 : vector<64x1xf32> to vector<64x64xf32>
    %12 = arith.subf %8, %11 : vector<64x64xf32>
    %13 = math.exp %12 : vector<64x64xf32>
    %cst_6 = arith.constant dense<0.000000e+00> : vector<64xf32>
    %14 = vector.multi_reduction <add>, %13, %cst_6 [1] : vector<64x64xf32> to vector<64xf32>
    %15 = vector.shape_cast %14 : vector<64xf32> to vector<64x1xf32>
    %16 = tpu.reciprocal %15 {approx = true} : vector<64x1xf32> -> vector<64x1xf32>
    %17 = vector.broadcast %16 : vector<64x1xf32> to vector<64x64xf32>
    %18 = arith.mulf %13, %17 : vector<64x64xf32>
    %19 = arith.truncf %18 : vector<64x64xf32> to vector<64x64xbf16>
    %cst_7 = arith.constant dense<0.000000e+00> : vector<64x32xf32>
    %20 = tpu.matmul %19, %7, %cst_7 {dimension_numbers = #tpu.dot_dimension_numbers<[1], [1], [0], [0], [0, 0, 1, 0], [], []>} : vector<64x64xbf16>, vector<32x64xbf16>, vector<64x32xf32> -> vector<64x32xf32>
    %21 = arith.truncf %20 : vector<64x32xf32> to vector<64x32xbf16>
    %c0_8 = arith.constant 0 : index
    %c0_9 = arith.constant 0 : index
    %c0_10 = arith.constant 0 : index
    %22 = vector.load %arg3[%c0_8, %c0_9, %c0_10] : memref<2x64x128xbf16, #tpu.memory_space<vmem>>, vector<1x64x32xbf16>
    %23 = vector.shape_cast %22 : vector<1x64x32xbf16> to vector<64x32xbf16>
    %24 = vector.shape_cast %21 : vector<64x32xbf16> to vector<1x64x32xbf16>
    tpu.vector_store %arg3[%c0_8, %c0_9, %c0_10], %24 {strides = array<i32>} : memref<2x64x128xbf16, #tpu.memory_space<vmem>>, vector<1x64x32xbf16>,
    %25 = vector.extract_strided_slice %4 {offsets = [32, 0], sizes = [32, 64], strides = [1, 1]} : vector<384x64xbf16> to vector<32x64xbf16>
    %26 = vector.extract_strided_slice %4 {offsets = [160, 0], sizes = [32, 64], strides = [1, 1]} : vector<384x64xbf16> to vector<32x64xbf16>
    %27 = vector.extract_strided_slice %4 {offsets = [288, 0], sizes = [32, 64], strides = [1, 1]} : vector<384x64xbf16> to vector<32x64xbf16>
    %cst_11 = arith.constant dense<0.000000e+00> : vector<64x64xf32>
    %28 = tpu.matmul %25, %26, %cst_11 {dimension_numbers = #tpu.dot_dimension_numbers<[0], [0], [1], [1], [0, 1, 1, 1], [], []>} : vector<32x64xbf16>, vector<32x64xbf16>, vector<64x64xf32> -> vector<64x64xf32>
    %cst_12 = arith.constant dense<0xFF800000> : vector<64xf32>
    %29 = vector.multi_reduction <maximumf>, %28, %cst_12 [1] : vector<64x64xf32> to vector<64xf32>
    %30 = vector.shape_cast %29 : vector<64xf32> to vector<64x1xf32>
    %31 = vector.broadcast %30 : vector<64x1xf32> to vector<64x64xf32>
    %32 = arith.subf %28, %31 : vector<64x64xf32>
    %33 = math.exp %32 : vector<64x64xf32>
    %cst_13 = arith.constant dense<0.000000e+00> : vector<64xf32>
    %34 = vector.multi_reduction <add>, %33, %cst_13 [1] : vector<64x64xf32> to vector<64xf32>
    %35 = vector.shape_cast %34 : vector<64xf32> to vector<64x1xf32>
    %36 = tpu.reciprocal %35 {approx = true} : vector<64x1xf32> -> vector<64x1xf32>
    %37 = vector.broadcast %36 : vector<64x1xf32> to vector<64x64xf32>
    %38 = arith.mulf %33, %37 : vector<64x64xf32>
    %39 = arith.truncf %38 : vector<64x64xf32> to vector<64x64xbf16>
    %cst_14 = arith.constant dense<0.000000e+00> : vector<64x32xf32>
    %40 = tpu.matmul %39, %27, %cst_14 {dimension_numbers = #tpu.dot_dimension_numbers<[1], [1], [0], [0], [0, 0, 1, 0], [], []>} : vector<64x64xbf16>, vector<32x64xbf16>, vector<64x32xf32> -> vector<64x32xf32>
    %41 = arith.truncf %40 : vector<64x32xf32> to vector<64x32xbf16>
    %c0_15 = arith.constant 0 : index
    %c0_16 = arith.constant 0 : index
    %c32 = arith.constant 32 : index
    %42 = vector.load %arg3[%c0_15, %c0_16, %c32] : memref<2x64x128xbf16, #tpu.memory_space<vmem>>, vector<1x64x32xbf16>
    %43 = vector.shape_cast %42 : vector<1x64x32xbf16> to vector<64x32xbf16>
    %44 = vector.shape_cast %41 : vector<64x32xbf16> to vector<1x64x32xbf16>
    tpu.vector_store %arg3[%c0_15, %c0_16, %c32], %44 {strides = array<i32>} : memref<2x64x128xbf16, #tpu.memory_space<vmem>>, vector<1x64x32xbf16>,
    %45 = vector.extract_strided_slice %4 {offsets = [64, 0], sizes = [32, 64], strides = [1, 1]} : vector<384x64xbf16> to vector<32x64xbf16>
    %46 = vector.extract_strided_slice %4 {offsets = [192, 0], sizes = [32, 64], strides = [1, 1]} : vector<384x64xbf16> to vector<32x64xbf16>
    %47 = vector.extract_strided_slice %4 {offsets = [320, 0], sizes = [32, 64], strides = [1, 1]} : vector<384x64xbf16> to vector<32x64xbf16>
    %cst_17 = arith.constant dense<0.000000e+00> : vector<64x64xf32>
    %48 = tpu.matmul %45, %46, %cst_17 {dimension_numbers = #tpu.dot_dimension_numbers<[0], [0], [1], [1], [0, 1, 1, 1], [], []>} : vector<32x64xbf16>, vector<32x64xbf16>, vector<64x64xf32> -> vector<64x64xf32>
    %cst_18 = arith.constant dense<0xFF800000> : vector<64xf32>
    %49 = vector.multi_reduction <maximumf>, %48, %cst_18 [1] : vector<64x64xf32> to vector<64xf32>
    %50 = vector.shape_cast %49 : vector<64xf32> to vector<64x1xf32>
    %51 = vector.broadcast %50 : vector<64x1xf32> to vector<64x64xf32>
    %52 = arith.subf %48, %51 : vector<64x64xf32>
    %53 = math.exp %52 : vector<64x64xf32>
    %cst_19 = arith.constant dense<0.000000e+00> : vector<64xf32>
    %54 = vector.multi_reduction <add>, %53, %cst_19 [1] : vector<64x64xf32> to vector<64xf32>
    %55 = vector.shape_cast %54 : vector<64xf32> to vector<64x1xf32>
    %56 = tpu.reciprocal %55 {approx = true} : vector<64x1xf32> -> vector<64x1xf32>
    %57 = vector.broadcast %56 : vector<64x1xf32> to vector<64x64xf32>
    %58 = arith.mulf %53, %57 : vector<64x64xf32>
    %59 = arith.truncf %58 : vector<64x64xf32> to vector<64x64xbf16>
    %cst_20 = arith.constant dense<0.000000e+00> : vector<64x32xf32>
    %60 = tpu.matmul %59, %47, %cst_20 {dimension_numbers = #tpu.dot_dimension_numbers<[1], [1], [0], [0], [0, 0, 1, 0], [], []>} : vector<64x64xbf16>, vector<32x64xbf16>, vector<64x32xf32> -> vector<64x32xf32>
    %61 = arith.truncf %60 : vector<64x32xf32> to vector<64x32xbf16>
    %c0_21 = arith.constant 0 : index
    %c0_22 = arith.constant 0 : index
    %c64 = arith.constant 64 : index
    %62 = vector.load %arg3[%c0_21, %c0_22, %c64] : memref<2x64x128xbf16, #tpu.memory_space<vmem>>, vector<1x64x32xbf16>
    %63 = vector.shape_cast %62 : vector<1x64x32xbf16> to vector<64x32xbf16>
    %64 = vector.shape_cast %61 : vector<64x32xbf16> to vector<1x64x32xbf16>
    tpu.vector_store %arg3[%c0_21, %c0_22, %c64], %64 {strides = array<i32>} : memref<2x64x128xbf16, #tpu.memory_space<vmem>>, vector<1x64x32xbf16>,
    %65 = vector.extract_strided_slice %4 {offsets = [96, 0], sizes = [32, 64], strides = [1, 1]} : vector<384x64xbf16> to vector<32x64xbf16>
    %66 = vector.extract_strided_slice %4 {offsets = [224, 0], sizes = [32, 64], strides = [1, 1]} : vector<384x64xbf16> to vector<32x64xbf16>
    %67 = vector.extract_strided_slice %4 {offsets = [352, 0], sizes = [32, 64], strides = [1, 1]} : vector<384x64xbf16> to vector<32x64xbf16>
    %cst_23 = arith.constant dense<0.000000e+00> : vector<64x64xf32>
    %68 = tpu.matmul %65, %66, %cst_23 {dimension_numbers = #tpu.dot_dimension_numbers<[0], [0], [1], [1], [0, 1, 1, 1], [], []>} : vector<32x64xbf16>, vector<32x64xbf16>, vector<64x64xf32> -> vector<64x64xf32>
    %cst_24 = arith.constant dense<0xFF800000> : vector<64xf32>
    %69 = vector.multi_reduction <maximumf>, %68, %cst_24 [1] : vector<64x64xf32> to vector<64xf32>
    %70 = vector.shape_cast %69 : vector<64xf32> to vector<64x1xf32>
    %71 = vector.broadcast %70 : vector<64x1xf32> to vector<64x64xf32>
    %72 = arith.subf %68, %71 : vector<64x64xf32>
    %73 = math.exp %72 : vector<64x64xf32>
    %cst_25 = arith.constant dense<0.000000e+00> : vector<64xf32>
    %74 = vector.multi_reduction <add>, %73, %cst_25 [1] : vector<64x64xf32> to vector<64xf32>
    %75 = vector.shape_cast %74 : vector<64xf32> to vector<64x1xf32>
    %76 = tpu.reciprocal %75 {approx = true} : vector<64x1xf32> -> vector<64x1xf32>
    %77 = vector.broadcast %76 : vector<64x1xf32> to vector<64x64xf32>
    %78 = arith.mulf %73, %77 : vector<64x64xf32>
    %79 = arith.truncf %78 : vector<64x64xf32> to vector<64x64xbf16>
    %cst_26 = arith.constant dense<0.000000e+00> : vector<64x32xf32>
    %80 = tpu.matmul %79, %67, %cst_26 {dimension_numbers = #tpu.dot_dimension_numbers<[1], [1], [0], [0], [0, 0, 1, 0], [], []>} : vector<64x64xbf16>, vector<32x64xbf16>, vector<64x32xf32> -> vector<64x32xf32>
    %81 = arith.truncf %80 : vector<64x32xf32> to vector<64x32xbf16>
    %c0_27 = arith.constant 0 : index
    %c0_28 = arith.constant 0 : index
    %c96 = arith.constant 96 : index
    %82 = vector.load %arg3[%c0_27, %c0_28, %c96] : memref<2x64x128xbf16, #tpu.memory_space<vmem>>, vector<1x64x32xbf16>
    %83 = vector.shape_cast %82 : vector<1x64x32xbf16> to vector<64x32xbf16>
    %84 = vector.shape_cast %81 : vector<64x32xbf16> to vector<1x64x32xbf16>
    tpu.vector_store %arg3[%c0_27, %c0_28, %c96], %84 {strides = array<i32>} : memref<2x64x128xbf16, #tpu.memory_space<vmem>>, vector<1x64x32xbf16>,
    %c1 = arith.constant 1 : index
    %c0_29 = arith.constant 0 : index
    %c0_30 = arith.constant 0 : index
    %85 = vector.load %arg1[%c1, %c0_29, %c0_30] : memref<2x8x64xbf16, #tpu.memory_space<vmem>>, vector<1x8x64xbf16>
    %86 = vector.shape_cast %85 : vector<1x8x64xbf16> to vector<8x64xbf16>
    %cst_31 = arith.constant dense<0.000000e+00> : vector<384x64xf32>
    %87 = tpu.matmul %0, %86, %cst_31 {dimension_numbers = #tpu.dot_dimension_numbers<[1], [0], [0], [1], [0, 0, 1, 1], [], []>} : vector<384x8xbf16>, vector<8x64xbf16>, vector<384x64xf32> -> vector<384x64xf32>
    %88 = arith.truncf %87 : vector<384x64xf32> to vector<384x64xbf16>
    %89 = vector.extract_strided_slice %88 {offsets = [0, 0], sizes = [32, 64], strides = [1, 1]} : vector<384x64xbf16> to vector<32x64xbf16>
    %90 = vector.extract_strided_slice %88 {offsets = [128, 0], sizes = [32, 64], strides = [1, 1]} : vector<384x64xbf16> to vector<32x64xbf16>
    %91 = vector.extract_strided_slice %88 {offsets = [256, 0], sizes = [32, 64], strides = [1, 1]} : vector<384x64xbf16> to vector<32x64xbf16>
    %cst_32 = arith.constant dense<0.000000e+00> : vector<64x64xf32>
    %92 = tpu.matmul %89, %90, %cst_32 {dimension_numbers = #tpu.dot_dimension_numbers<[0], [0], [1], [1], [0, 1, 1, 1], [], []>} : vector<32x64xbf16>, vector<32x64xbf16>, vector<64x64xf32> -> vector<64x64xf32>
    %cst_33 = arith.constant dense<0xFF800000> : vector<64xf32>
    %93 = vector.multi_reduction <maximumf>, %92, %cst_33 [1] : vector<64x64xf32> to vector<64xf32>
    %94 = vector.shape_cast %93 : vector<64xf32> to vector<64x1xf32>
    %95 = vector.broadcast %94 : vector<64x1xf32> to vector<64x64xf32>
    %96 = arith.subf %92, %95 : vector<64x64xf32>
    %97 = math.exp %96 : vector<64x64xf32>
    %cst_34 = arith.constant dense<0.000000e+00> : vector<64xf32>
    %98 = vector.multi_reduction <add>, %97, %cst_34 [1] : vector<64x64xf32> to vector<64xf32>
    %99 = vector.shape_cast %98 : vector<64xf32> to vector<64x1xf32>
    %100 = tpu.reciprocal %99 {approx = true} : vector<64x1xf32> -> vector<64x1xf32>
    %101 = vector.broadcast %100 : vector<64x1xf32> to vector<64x64xf32>
    %102 = arith.mulf %97, %101 : vector<64x64xf32>
    %103 = arith.truncf %102 : vector<64x64xf32> to vector<64x64xbf16>
    %cst_35 = arith.constant dense<0.000000e+00> : vector<64x32xf32>
    %104 = tpu.matmul %103, %91, %cst_35 {dimension_numbers = #tpu.dot_dimension_numbers<[1], [1], [0], [0], [0, 0, 1, 0], [], []>} : vector<64x64xbf16>, vector<32x64xbf16>, vector<64x32xf32> -> vector<64x32xf32>
    %105 = arith.truncf %104 : vector<64x32xf32> to vector<64x32xbf16>
    %c1_36 = arith.constant 1 : index
    %c0_37 = arith.constant 0 : index
    %c0_38 = arith.constant 0 : index
    %106 = vector.load %arg3[%c1_36, %c0_37, %c0_38] : memref<2x64x128xbf16, #tpu.memory_space<vmem>>, vector<1x64x32xbf16>
    %107 = vector.shape_cast %106 : vector<1x64x32xbf16> to vector<64x32xbf16>
    %108 = vector.shape_cast %105 : vector<64x32xbf16> to vector<1x64x32xbf16>
    tpu.vector_store %arg3[%c1_36, %c0_37, %c0_38], %108 {strides = array<i32>} : memref<2x64x128xbf16, #tpu.memory_space<vmem>>, vector<1x64x32xbf16>,
    %109 = vector.extract_strided_slice %88 {offsets = [32, 0], sizes = [32, 64], strides = [1, 1]} : vector<384x64xbf16> to vector<32x64xbf16>
    %110 = vector.extract_strided_slice %88 {offsets = [160, 0], sizes = [32, 64], strides = [1, 1]} : vector<384x64xbf16> to vector<32x64xbf16>
    %111 = vector.extract_strided_slice %88 {offsets = [288, 0], sizes = [32, 64], strides = [1, 1]} : vector<384x64xbf16> to vector<32x64xbf16>
    %cst_39 = arith.constant dense<0.000000e+00> : vector<64x64xf32>
    %112 = tpu.matmul %109, %110, %cst_39 {dimension_numbers = #tpu.dot_dimension_numbers<[0], [0], [1], [1], [0, 1, 1, 1], [], []>} : vector<32x64xbf16>, vector<32x64xbf16>, vector<64x64xf32> -> vector<64x64xf32>
    %cst_40 = arith.constant dense<0xFF800000> : vector<64xf32>
    %113 = vector.multi_reduction <maximumf>, %112, %cst_40 [1] : vector<64x64xf32> to vector<64xf32>
    %114 = vector.shape_cast %113 : vector<64xf32> to vector<64x1xf32>
    %115 = vector.broadcast %114 : vector<64x1xf32> to vector<64x64xf32>
    %116 = arith.subf %112, %115 : vector<64x64xf32>
    %117 = math.exp %116 : vector<64x64xf32>
    %cst_41 = arith.constant dense<0.000000e+00> : vector<64xf32>
    %118 = vector.multi_reduction <add>, %117, %cst_41 [1] : vector<64x64xf32> to vector<64xf32>
    %119 = vector.shape_cast %118 : vector<64xf32> to vector<64x1xf32>
    %120 = tpu.reciprocal %119 {approx = true} : vector<64x1xf32> -> vector<64x1xf32>
    %121 = vector.broadcast %120 : vector<64x1xf32> to vector<64x64xf32>
    %122 = arith.mulf %117, %121 : vector<64x64xf32>
    %123 = arith.truncf %122 : vector<64x64xf32> to vector<64x64xbf16>
    %cst_42 = arith.constant dense<0.000000e+00> : vector<64x32xf32>
    %124 = tpu.matmul %123, %111, %cst_42 {dimension_numbers = #tpu.dot_dimension_numbers<[1], [1], [0], [0], [0, 0, 1, 0], [], []>} : vector<64x64xbf16>, vector<32x64xbf16>, vector<64x32xf32> -> vector<64x32xf32>
    %125 = arith.truncf %124 : vector<64x32xf32> to vector<64x32xbf16>
    %c1_43 = arith.constant 1 : index
    %c0_44 = arith.constant 0 : index
    %c32_45 = arith.constant 32 : index
    %126 = vector.load %arg3[%c1_43, %c0_44, %c32_45] : memref<2x64x128xbf16, #tpu.memory_space<vmem>>, vector<1x64x32xbf16>
    %127 = vector.shape_cast %126 : vector<1x64x32xbf16> to vector<64x32xbf16>
    %128 = vector.shape_cast %125 : vector<64x32xbf16> to vector<1x64x32xbf16>
    tpu.vector_store %arg3[%c1_43, %c0_44, %c32_45], %128 {strides = array<i32>} : memref<2x64x128xbf16, #tpu.memory_space<vmem>>, vector<1x64x32xbf16>,
    %129 = vector.extract_strided_slice %88 {offsets = [64, 0], sizes = [32, 64], strides = [1, 1]} : vector<384x64xbf16> to vector<32x64xbf16>
    %130 = vector.extract_strided_slice %88 {offsets = [192, 0], sizes = [32, 64], strides = [1, 1]} : vector<384x64xbf16> to vector<32x64xbf16>
    %131 = vector.extract_strided_slice %88 {offsets = [320, 0], sizes = [32, 64], strides = [1, 1]} : vector<384x64xbf16> to vector<32x64xbf16>
    %cst_46 = arith.constant dense<0.000000e+00> : vector<64x64xf32>
    %132 = tpu.matmul %129, %130, %cst_46 {dimension_numbers = #tpu.dot_dimension_numbers<[0], [0], [1], [1], [0, 1, 1, 1], [], []>} : vector<32x64xbf16>, vector<32x64xbf16>, vector<64x64xf32> -> vector<64x64xf32>
    %cst_47 = arith.constant dense<0xFF800000> : vector<64xf32>
    %133 = vector.multi_reduction <maximumf>, %132, %cst_47 [1] : vector<64x64xf32> to vector<64xf32>
    %134 = vector.shape_cast %133 : vector<64xf32> to vector<64x1xf32>
    %135 = vector.broadcast %134 : vector<64x1xf32> to vector<64x64xf32>
    %136 = arith.subf %132, %135 : vector<64x64xf32>
    %137 = math.exp %136 : vector<64x64xf32>
    %cst_48 = arith.constant dense<0.000000e+00> : vector<64xf32>
    %138 = vector.multi_reduction <add>, %137, %cst_48 [1] : vector<64x64xf32> to vector<64xf32>
    %139 = vector.shape_cast %138 : vector<64xf32> to vector<64x1xf32>
    %140 = tpu.reciprocal %139 {approx = true} : vector<64x1xf32> -> vector<64x1xf32>
    %141 = vector.broadcast %140 : vector<64x1xf32> to vector<64x64xf32>
    %142 = arith.mulf %137, %141 : vector<64x64xf32>
    %143 = arith.truncf %142 : vector<64x64xf32> to vector<64x64xbf16>
    %cst_49 = arith.constant dense<0.000000e+00> : vector<64x32xf32>
    %144 = tpu.matmul %143, %131, %cst_49 {dimension_numbers = #tpu.dot_dimension_numbers<[1], [1], [0], [0], [0, 0, 1, 0], [], []>} : vector<64x64xbf16>, vector<32x64xbf16>, vector<64x32xf32> -> vector<64x32xf32>
    %145 = arith.truncf %144 : vector<64x32xf32> to vector<64x32xbf16>
    %c1_50 = arith.constant 1 : index
    %c0_51 = arith.constant 0 : index
    %c64_52 = arith.constant 64 : index
    %146 = vector.load %arg3[%c1_50, %c0_51, %c64_52] : memref<2x64x128xbf16, #tpu.memory_space<vmem>>, vector<1x64x32xbf16>
    %147 = vector.shape_cast %146 : vector<1x64x32xbf16> to vector<64x32xbf16>
    %148 = vector.shape_cast %145 : vector<64x32xbf16> to vector<1x64x32xbf16>
    tpu.vector_store %arg3[%c1_50, %c0_51, %c64_52], %148 {strides = array<i32>} : memref<2x64x128xbf16, #tpu.memory_space<vmem>>, vector<1x64x32xbf16>,
    %149 = vector.extract_strided_slice %88 {offsets = [96, 0], sizes = [32, 64], strides = [1, 1]} : vector<384x64xbf16> to vector<32x64xbf16>
    %150 = vector.extract_strided_slice %88 {offsets = [224, 0], sizes = [32, 64], strides = [1, 1]} : vector<384x64xbf16> to vector<32x64xbf16>
    %151 = vector.extract_strided_slice %88 {offsets = [352, 0], sizes = [32, 64], strides = [1, 1]} : vector<384x64xbf16> to vector<32x64xbf16>
    %cst_53 = arith.constant dense<0.000000e+00> : vector<64x64xf32>
    %152 = tpu.matmul %149, %150, %cst_53 {dimension_numbers = #tpu.dot_dimension_numbers<[0], [0], [1], [1], [0, 1, 1, 1], [], []>} : vector<32x64xbf16>, vector<32x64xbf16>, vector<64x64xf32> -> vector<64x64xf32>
    %cst_54 = arith.constant dense<0xFF800000> : vector<64xf32>
    %153 = vector.multi_reduction <maximumf>, %152, %cst_54 [1] : vector<64x64xf32> to vector<64xf32>
    %154 = vector.shape_cast %153 : vector<64xf32> to vector<64x1xf32>
    %155 = vector.broadcast %154 : vector<64x1xf32> to vector<64x64xf32>
    %156 = arith.subf %152, %155 : vector<64x64xf32>
    %157 = math.exp %156 : vector<64x64xf32>
    %cst_55 = arith.constant dense<0.000000e+00> : vector<64xf32>
    %158 = vector.multi_reduction <add>, %157, %cst_55 [1] : vector<64x64xf32> to vector<64xf32>
    %159 = vector.shape_cast %158 : vector<64xf32> to vector<64x1xf32>
    %160 = tpu.reciprocal %159 {approx = true} : vector<64x1xf32> -> vector<64x1xf32>
    %161 = vector.broadcast %160 : vector<64x1xf32> to vector<64x64xf32>
    %162 = arith.mulf %157, %161 : vector<64x64xf32>
    %163 = arith.truncf %162 : vector<64x64xf32> to vector<64x64xbf16>
    %cst_56 = arith.constant dense<0.000000e+00> : vector<64x32xf32>
    %164 = tpu.matmul %163, %151, %cst_56 {dimension_numbers = #tpu.dot_dimension_numbers<[1], [1], [0], [0], [0, 0, 1, 0], [], []>} : vector<64x64xbf16>, vector<32x64xbf16>, vector<64x32xf32> -> vector<64x32xf32>
    %165 = arith.truncf %164 : vector<64x32xf32> to vector<64x32xbf16>
    %c1_57 = arith.constant 1 : index
    %c0_58 = arith.constant 0 : index
    %c96_59 = arith.constant 96 : index
    %166 = vector.load %arg3[%c1_57, %c0_58, %c96_59] : memref<2x64x128xbf16, #tpu.memory_space<vmem>>, vector<1x64x32xbf16>
    %167 = vector.shape_cast %166 : vector<1x64x32xbf16> to vector<64x32xbf16>
    %168 = vector.shape_cast %165 : vector<64x32xbf16> to vector<1x64x32xbf16>
    tpu.vector_store %arg3[%c1_57, %c0_58, %c96_59], %168 {strides = array<i32>} : memref<2x64x128xbf16, #tpu.memory_space<vmem>>, vector<1x64x32xbf16>,
    return
  }
  func.func @transform_0(%arg0: i32) -> (i32, i32, i32) {
    %c0_i32 = arith.constant 0 : i32
    %c0_i32_0 = arith.constant 0 : i32
    %c0_i32_1 = arith.constant 0 : i32
    return %arg0, %c0_i32, %c0_i32_0 : i32, i32, i32
  }
  func.func @transform_1(%arg0: i32) -> (i32, i32) {
    %c0_i32 = arith.constant 0 : i32
    %c0_i32_0 = arith.constant 0 : i32
    %c0_i32_1 = arith.constant 0 : i32
    return %c0_i32, %c0_i32_0 : i32, i32
  }
  func.func @transform_2(%arg0: i32) -> (i32, i32, i32) {
    %c0_i32 = arith.constant 0 : i32
    %c0_i32_0 = arith.constant 0 : i32
    %c0_i32_1 = arith.constant 0 : i32
    return %arg0, %c0_i32, %c0_i32_0 : i32, i32, i32
  }
}

</mosaic_0001>

<bundles_post_ra>
// kernel: tpu_custom_call.1
= control target key start
LH: loop header
LB: loop body
LE: loop exit
PB: predicated region body
PF: predicated region fallthrough
CT: control target
= control target key end

     0   :  { %vm255_vm0 = vcmask 1043456   ;;  %vm182_vm1 = vcmask 64512   ;;  %s5562_s0 = inlined_call_operand.vmem [shape: bf16[2,8,64], index: 0, kind: input, shape index: {}]   ;;  %s5563_s1 = inlined_call_operand.vmem [shape: bf16[384,8], index: 1, kind: input, shape index: {}]   ;;  %s5564_s2 = inlined_call_operand.hbm [shape: bf16[2,64,128], index: 2, kind: output, shape index: {}]  }
   0x1   :  { %v61_v0 = vld [vmem:[%s5562_s0] sm:$0xf]  ;;  %v4411_v3 = vld [vmem:[%s5563_s1 + $0x8] sm:$0xff]   ;;  %v4416_v4 = vld [vmem:[%s5563_s1 + $0x10] sm:$0xff]  }
   0x2   :  { %v4402_v1 = vld [vmem:[%s5563_s1] sm:$0xff]   ;;  %4048 = vmatprep.subr.msk.bf16.mxu0 %vm255_vm0, %v61_v0  ;;  %v257_v2 = vsel %vm255_vm0, %v61_v0, 0  ;;  %v4425_v5 = vld [vmem:[%s5563_s1 + $0x18] sm:$0xff]   ;;  %v4439_v7 = vld [vmem:[%s5563_s1 + $0x28] sm:$0xff]  }
   0x3   :  { %3757 = vmatpush3.bf16.msra.mxu0 %v257_v2  ;;  %3758 = vmatprep.mubr.msk.bf16.mxu0 %vm182_vm1, %v4402_v1  ;;  %v4430_v6 = vld [vmem:[%s5563_s1 + $0x20] sm:$0xff]   ;;  %v4444_v8 = vld [vmem:[%s5563_s1 + $0x30] sm:$0xff]  }
   0x6   :  { %3759 = vmatmul.mubr.msk.bf16.vlgmr.msra.gmra.mrb[0].mxu0 %vm182_vm1, %v4411_v3 }
   0x7   :  { %3762 = vmatprep.mubr.msk.bf16.mxu0 %vm182_vm1, %v4416_v4 }
   0xe   :  { %3763 = vmatmul.mubr.msk.bf16.gmra.mrb[4].mxu0 %vm182_vm1, %v4425_v5 }
   0xf   :  { %3766 = vmatprep.mubr.msk.bf16.mxu0 %vm182_vm1, %v4430_v6 }
  0x10   :  { %7 = vsyncpa [#allocation3], 0  ;;  %v4453_v9 = vld [vmem:[%s5563_s1 + $0x38] sm:$0xff]   ;;  %v4458_v10 = vld [vmem:[%s5563_s1 + $0x40] sm:$0xff]   ;;  %vm524_vm2 = vcmask 261120   ;;  %vm602_vm3 = vcmask 523264  }
  0x11   :  { %v4467_v11 = vld [vmem:[%s5563_s1 + $0x48] sm:$0xff]   ;;  %v4514_v46 = vld [vmem:[%s5563_s1 + $0x50] sm:$0xff]   ;;  %v4519_v47 = vld [vmem:[%s5563_s1 + $0x58] sm:$0xff]   ;;  %vm810_vm4 = vcmask 257024   ;;  %s4377_s4 = smov 64   ;;  %s4378_s5 = smov 96  }
  0x12   :  { %v4524_v48 = vld [vmem:[%s5563_s1 + $0x60] sm:$0xff]   ;;  %v4535_v49 = vld [vmem:[%s5563_s1 + $0x68] sm:$0xff]   ;;  %v4540_v50 = vld [vmem:[%s5563_s1 + $0x70] sm:$0xff]   ;;  %vm1135_vm5 = vcmask 519424   ;;  %vm1460_vm6 = vcmask 781824   ;;  %vm1785_vm7 = vcmask 1044224  }
  0x13   :  { %v4549_v51 = vld [vmem:[%s5563_s1 + $0x78] sm:$0xff]   ;;  %v4554_v52 = vld [vmem:[%s5563_s1 + $0x80] sm:$0xff]   ;;  %v4563_v53 = vld [vmem:[%s5563_s1 + $0x88] sm:$0xff]   ;;  %s4379_s6 = smov [#allocation2]  }
  0x14   :  { %v4568_v54 = vld [vmem:[%s5563_s1 + $0x90] sm:$0xff]   ;;  %v4577_v55 = vld [vmem:[%s5563_s1 + $0x98] sm:$0xff]   ;;  %s3334_s7 = sshll.u32 %s4379_s6, 4  ;;  %s3335_s7 = int_to_ptr.vmem [resolvable:$true] %s3334_s7 }
  0x15   :  { %s4352_s8 = scalar_lea.vmem %s3335_s7, 1024  ;;  %p4357_p1 = scmp.lt.s32.totalorder %s3335_s7, %s3335_s7 }
  0x16   :  { %3767 = vmatmul.mubr.msk.bf16.gmra.mrb[8].mxu0 %vm182_vm1, %v4439_v7  ;;  %p4353_p0 = scmp.ne.s32.totalorder %s3335_s7, %s4352_s8  ;;  %p4358_p2 = scmp.lt.s32.totalorder %s4352_s8, %s4352_s8 }
  0x17   :  { %3770 = vmatprep.mubr.msk.bf16.mxu0 %vm182_vm1, %v4444_v8 }
  0x18   :  { %p4359_p3 = por %p4358_p2, %p4357_p1 }
  0x1a   :  { %p4360_p4 = pnand %p4359_p3, %p4353_p0 }
  0x1e   :  { %3771 = vmatmul.mubr.msk.bf16.gmra.mrb[12].mxu0 %vm182_vm1, %v4453_v9 }
  0x1f   :  { %3774 = vmatprep.mubr.msk.bf16.mxu0 %vm182_vm1, %v4458_v10 }
  0x26   :  { %3775 = vmatmul.mubr.msk.bf16.gmra.mrb[16].mxu0 %vm182_vm1, %v4467_v11 }
  0x27   :  { %3778 = vmatprep.mubr.msk.bf16.mxu0 %vm182_vm1, %v4514_v46 }
  0x2e   :  { %3779 = vmatmul.mubr.msk.bf16.gmra.mrb[20].mxu0 %vm182_vm1, %v4519_v47 }
  0x2f   :  { %3782 = vmatprep.mubr.msk.bf16.mxu0 %vm182_vm1, %v4524_v48 }
  0x36   :  { %3783 = vmatmul.mubr.msk.bf16.gmra.mrb[24].mxu0 %vm182_vm1, %v4535_v49 }
  0x37   :  { %3786 = vmatprep.mubr.msk.bf16.mxu0 %vm182_vm1, %v4540_v50 }
  0x3e   :  { %3787 = vmatmul.mubr.msk.bf16.gmra.mrb[28].mxu0 %vm182_vm1, %v4549_v51 }
  0x3f   :  { %3790 = vmatprep.mubr.msk.bf16.mxu0 %vm182_vm1, %v4554_v52 }
  0x46   :  { %3791 = vmatmul.mubr.msk.bf16.gmra.mrb[32].mxu0 %vm182_vm1, %v4563_v53 }
  0x47   :  { %3794 = vmatprep.mubr.msk.bf16.mxu0 %vm182_vm1, %v4568_v54 }
  0x4e   :  { %3795 = vmatmul.mubr.msk.bf16.gmra.mrb[36].mxu0 %vm182_vm1, %v4577_v55 }
  0xd9   :  { %v3760_v12 = vpop.f32.mrb[0].mxu0 }
  0xda   :  { %v293_v13 = vpop.f32.mrb[1].mxu0 }
  0xdb   :  { %v3761_v14 = vpop.f32.mrb[2].mxu0 }
  0xdc   :  { %v485_v15 = vpack.c.bf16 %v3761_v14, %v3760_v12  ;;  %v296_v16 = vpop.f32.mrb[3].mxu0 }
  0xdd   :  { %v484_v17 = vpack.c.bf16 %v296_v16, %v293_v13 }
  0xdf   :  { %508 = vxpose.xlu0.c.b16.start [1/2] (short) (narrow) %v484_v17, 64 }
  0xe1   :  { %v4471_v18 = vpop.f32.mrb[4].mxu0 }
  0xe2   :  { %v4473_v19 = vpop.f32.mrb[5].mxu0 }
  0xe3   :  { %509 = vxpose.xlu0.c.b16.end [2/2] (short) (narrow) %v485_v15, 64  ;;  %v4475_v20 = vpop.f32.mrb[6].mxu0 }
  0xe4   :  { %v487_v21 = vpack.c.bf16 %v4475_v20, %v4471_v18  ;;  %v4479_v22 = vpop.f32.mrb[7].mxu0 }
  0xe5   :  { %v486_v23 = vpack.c.bf16 %v4479_v22, %v4473_v19 }
  0xe9   :  { %v4483_v24 = vpop.f32.mrb[8].mxu0 }
  0xea   :  { %v4485_v25 = vpop.f32.mrb[9].mxu0 }
  0xeb   :  { %v4487_v26 = vpop.f32.mrb[10].mxu0 }
  0xec   :  { %v4491_v28 = vpop.f32.mrb[11].mxu0 }
  0xf1   :  { %v4495_v30 = vpop.f32.mrb[12].mxu0 }
  0xf2   :  { %v4497_v31 = vpop.f32.mrb[13].mxu0 }
  0xf3   :  { %v4499_v32 = vpop.f32.mrb[14].mxu0 }
  0xf4   :  { %v491_v33 = vpack.c.bf16 %v4499_v32, %v4495_v30  ;;  %v4503_v34 = vpop.f32.mrb[15].mxu0 }
  0xf5   :  { %v490_v35 = vpack.c.bf16 %v4503_v34, %v4497_v31 }
  0xf9   :  { %v3776_v36 = vpop.f32.mrb[16].mxu0 }
  0xfa   :  { %v357_v37 = vpop.f32.mrb[17].mxu0 }
  0xfb   :  { %v3777_v38 = vpop.f32.mrb[18].mxu0 }
  0xfc   :  { %v493_v39 = vpack.c.bf16 %v3777_v38, %v3776_v36  ;;  %v360_v40 = vpop.f32.mrb[19].mxu0 }
  0xfd   :  { %v492_v41 = vpack.c.bf16 %v360_v40, %v357_v37 }
  0xff   :  { %3806 = vmatprep.subr.bf16.mxu1 %v492_v41 }
 0x100   :  { %3807 = vmatpush3.bf16.msra.mxu1 %v492_v41 }
 0x101   :  { %3808 = vmatprep.subr.bf16.mxu1 %v493_v39  ;;  %v3780_v36 = vpop.f32.mrb[20].mxu0 }
 0x102   :  { %v373_v37 = vpop.f32.mrb[21].mxu0 }
 0x103   :  { %v3781_v38 = vpop.f32.mrb[22].mxu0 }
 0x104   :  { %3809 = vmatpush3.bf16.msra.mxu1 %v493_v39  ;;  %v4607_v39 = vpack.c.bf16 %v3781_v38, %v3780_v36  ;;  %v376_v40 = vpop.f32.mrb[23].mxu0 }
 0x105   :  { %v4609_v41 = vpack.c.bf16 %v376_v40, %v373_v37 }
 0x145   :  { %v516_v42 = vpop.trf.xlu0 }
 0x146   :  { %3810 = vmatprep.mubr.msk.bf16.mxu1 %vm524_vm2, %v516_v42  ;;  %v3784_v42 = vpop.f32.mrb[24].mxu0 }
 0x149   :  { %v517_v43 = vpop.trf.xlu0 }
 0x14a   :  { %3811 = vmatmul.mubr.msk.bf16.vlgmr.msra.gmra.mrb[0].mxu1 %vm524_vm2, %v517_v43  ;;  %v389_v43 = vpop.f32.mrb[25].mxu0 }
 0x14d   :  { %v518_v44 = vpop.trf.xlu0 }
 0x14e   :  { %3814 = vmatprep.mubr.msk.bf16.mxu1 %vm524_vm2, %v518_v44  ;;  %v3785_v44 = vpop.f32.mrb[26].mxu0 }
 0x151   :  { %v519_v45 = vpop.trf.xlu0 }
 0x152   :  { %3815 = vmatmul.mubr.msk.bf16.gmra.mrb[4].mxu1 %vm524_vm2, %v519_v45  ;;  %v4611_v45 = vpack.c.bf16 %v3785_v44, %v3784_v42 }
 0x21d   :  { %v3812_v56 = vpop.f32.mrb[0].mxu1 }
 0x21e   :  { %v571_v57 = vpop.f32.mrb[1].mxu1  ;;  %v609_v58 = vsel %vm602_vm3, %v3812_v56, -inf }
 0x21f   :  { %610 = vmax.xlane.f32.xlu0 %v609_v58  ;;  %v4582_v59 = vpop.f32.mrb[2].mxu1  ;;  %v603_v60 = vsel %vm602_vm3, %v571_v57, -inf  ;;  %v392_v58 = vpop.f32.mrb[27].mxu0 }
 0x220   :  { %604 = vmax.xlane.f32.xlu1 %v603_v60  ;;  %v4585_v61 = vpop.f32.mrb[3].mxu1  ;;  %v612_v62 = vsel %vm602_vm3, %v4582_v59, -inf  ;;  %v4613_v60 = vpack.c.bf16 %v392_v58, %v389_v43 }
 0x221   :  { %v606_v2 = vsel %vm602_vm3, %v4585_v61, -inf }
 0x224   :  { %613 = vmax.xlane.f32.xlu1 %v612_v62  ;;  %v3788_v62 = vpop.f32.mrb[28].mxu0 }
 0x225   :  { %v4589_v63 = vpop.f32.mrb[4].mxu1 }
 0x226   :  { %v4591_v0 = vpop.f32.mrb[5].mxu1  ;;  %v621_v14 = vsel %vm602_vm3, %v4589_v63, -inf }
 0x227   :  { %v4595_v12 = vpop.f32.mrb[6].mxu1  ;;  %v615_v15 = vsel %vm602_vm3, %v4591_v0, -inf }
 0x228   :  { %607 = vmax.xlane.f32.xlu1 %v606_v2  ;;  %v4597_v13 = vpop.f32.mrb[7].mxu1  ;;  %v624_v17 = vsel %vm602_vm3, %v4595_v12, -inf  ;;  %v405_v2 = vpop.f32.mrb[29].mxu0 }
 0x229   :  { %v618_v16 = vsel %vm602_vm3, %v4597_v13, -inf }
 0x22c   :  { %622 = vmax.xlane.f32.xlu1 %v621_v14  ;;  %v3789_v14 = vpop.f32.mrb[30].mxu0 }
 0x230   :  { %616 = vmax.xlane.f32.xlu1 %v615_v15  ;;  %v499_v15 = vpack.c.bf16 %v3789_v14, %v3788_v62 }
 0x234   :  { %619 = vmax.xlane.f32.xlu1 %v618_v16  ;;  %v408_v16 = vpop.f32.mrb[31].mxu0 }
 0x235   :  { %v3792_v36 = vpop.f32.mrb[32].mxu0 }
 0x236   :  { %v421_v37 = vpop.f32.mrb[33].mxu0 }
 0x237   :  { %v3793_v38 = vpop.f32.mrb[34].mxu0 }
 0x238   :  { %625 = vmax.xlane.f32.xlu1 %v624_v17  ;;  %v498_v17 = vpack.c.bf16 %v408_v16, %v405_v2  ;;  %v501_v40 = vpack.c.bf16 %v3793_v38, %v3792_v36  ;;  %v424_v27 = vpop.f32.mrb[35].mxu0 }
 0x239   :  { %v500_v42 = vpack.c.bf16 %v424_v27, %v421_v37 }
 0x23a   :  { %3878 = vmatprep.subr.bf16.mxu0 %v498_v17 }
 0x23b   :  { %3879 = vmatpush3.bf16.msra.mxu0 %v498_v17  ;;  %v708_v43 = vsel %vm602_vm3, %v500_v42, 0  ;;  %4049 = vmatprep.subr.msk.bf16.mxu1 %vm602_vm3, %v500_v42  ;;  %v711_v17 = vsel %vm602_vm3, %v501_v40, 0 }
 0x23c   :  { %3880 = vmatprep.subr.bf16.mxu0 %v499_v15  ;;  %3819 = vmatpush3.bf16.xpose.msra.mxu1 %v708_v43 }
 0x23d   :  { %4050 = vmatprep.subr.msk.bf16.mxu1 %vm602_vm3, %v501_v40 }
 0x23f   :  { %3881 = vmatpush3.bf16.msra.mxu0 %v499_v15 }
 0x244   :  { %3821 = vmatpush3.bf16.xpose.msra.mxu1 %v711_v17 }
 0x245   :  { %3830 = vmatprep.subr.bf16.mxu1 %v4609_v41 }
 0x2ac   :  { %v611_v44 = vpop.xlane.xlu0 %610 }
 0x2ad   :  { %v629_v58 = vsub.f32 %v3812_v56, %v611_v44  ;;  %v605_v29 = vpop.xlane.xlu1 %604 }
 0x2ae   :  { %v627_v62 = vsub.f32 %v571_v57, %v605_v29 }
 0x2af   :  { %v639_v2 = vmul.f32 1.442695, %v629_v58 }
 0x2b0   :  { %v635_v14 = vmul.f32 1.442695, %v627_v62 }
 0x2b1   :  { %v614_v16 = vpop.xlane.xlu1 %613 }
 0x2b2   :  { %4096 = vpow2.f32 %v635_v14  ;;  %v630_v27 = vsub.f32 %v4582_v59, %v614_v16 }
 0x2b3   :  { %4098 = vpow2.f32 %v639_v2 }
 0x2b4   :  { %v641_v56 = vmul.f32 1.442695, %v630_v27 }
 0x2b5   :  { %v608_v15 = vpop.xlane.xlu1 %607 }
 0x2b6   :  { %v628_v36 = vsub.f32 %v4585_v61, %v608_v15 }
 0x2b8   :  { %v637_v37 = vmul.f32 1.442695, %v628_v36 }
 0x2b9   :  { %v623_v29 = vpop.xlane.xlu1 %622 }
 0x2ba   :  { %4100 = vpow2.f32 %v637_v37  ;;  %v633_v38 = vsub.f32 %v4589_v63, %v623_v29 }
 0x2bb   :  { %4102 = vpow2.f32 %v641_v56 }
 0x2bc   :  { %v4097_v57 = vpop.eup %4096  ;;  %v647_v43 = vmul.f32 1.442695, %v633_v38 }
 0x2bd   :  { %v617_v42 = vpop.xlane.xlu1 %616  ;;  %v651_v40 = vsel %vm602_vm3, %v4097_v57, 0.0  ;;  %v4624_v44 = vpop.eup %4098 }
 0x2be   :  { %v631_v59 = vsub.f32 %v4591_v0, %v617_v42  ;;  %652 = vadd.xlane.f32.xlu1 %v651_v40  ;;  %v657_v62 = vsel %vm602_vm3, %v4624_v44, 0.0 }
 0x2c0   :  { %v643_v61 = vmul.f32 1.442695, %v631_v59  ;;  %v3796_v59 = vpop.f32.mrb[36].mxu0 }
 0x2c1   :  { %v620_v58 = vpop.xlane.xlu1 %619 }
 0x2c2   :  { %4104 = vpow2.f32 %v643_v61  ;;  %v632_v2 = vsub.f32 %v4597_v13, %v620_v58  ;;  %658 = vadd.xlane.f32.xlu1 %v657_v62 }
 0x2c3   :  { %4106 = vpow2.f32 %v647_v43  ;;  %v437_v43 = vpop.f32.mrb[37].mxu0 }
 0x2c4   :  { %v4101_v14 = vpop.eup %4100  ;;  %v645_v63 = vmul.f32 1.442695, %v632_v2  ;;  %v3797_v61 = vpop.f32.mrb[38].mxu0 }
 0x2c5   :  { %v626_v16 = vpop.xlane.xlu1 %625  ;;  %v654_v17 = vsel %vm602_vm3, %v4101_v14, 0.0  ;;  %v4103_v27 = vpop.eup %4102  ;;  %v503_v58 = vpack.c.bf16 %v3797_v61, %v3796_v59 }
 0x2c6   :  { %4108 = vpow2.f32 %v645_v63  ;;  %v634_v0 = vsub.f32 %v4595_v12, %v626_v16  ;;  %655 = vadd.xlane.f32.xlu0 %v654_v17  ;;  %v660_v36 = vsel %vm602_vm3, %v4103_v27, 0.0  ;;  %v440_v62 = vpop.f32.mrb[39].mxu0 }
 0x2c7   :  { %v502_v2 = vpack.c.bf16 %v440_v62, %v437_v43 }
 0x2c8   :  { %v649_v15 = vmul.f32 1.442695, %v634_v0 }
 0x2ca   :  { %4110 = vpow2.f32 %v649_v15  ;;  %661 = vadd.xlane.f32.xlu0 %v660_v36 }
 0x2cc   :  { %v4105_v56 = vpop.eup %4104 }
 0x2cd   :  { %v663_v13 = vsel %vm602_vm3, %v4105_v56, 0.0  ;;  %v4107_v37 = vpop.eup %4106 }
 0x2ce   :  { %664 = vadd.xlane.f32.xlu1 %v663_v13  ;;  %v669_v38 = vsel %vm602_vm3, %v4107_v37, 0.0 }
 0x2d0   :  { %v4109_v29 = vpop.eup %4108 }
 0x2d1   :  { %v666_v42 = vsel %vm602_vm3, %v4109_v29, 0.0 }
 0x2d2   :  { %670 = vadd.xlane.f32.xlu1 %v669_v38  ;;  %667 = vadd.xlane.f32.xlu0 %v666_v42 }
 0x2d4   :  { %v4111_v40 = vpop.eup %4110 }
 0x2d5   :  { %v672_v12 = vsel %vm602_vm3, %v4111_v40, 0.0 }
 0x2d6   :  { %673 = vadd.xlane.f32.xlu0 %v672_v12 }
 0x2ff   :  { %819 = vxpose.xlu1.c.b16.start [1/2] (short) (narrow) %v486_v23, 64 }
 0x303   :  { %820 = vxpose.xlu1.c.b16.end [2/2] (short) (narrow) %v487_v21, 64 }
 0x34b   :  { %v653_v63 = vpop.xlane.xlu1 %652 }
 0x34c   :  { %4112 = vrcp.f32 %v653_v63 }
 0x34f   :  { %v659_v16 = vpop.xlane.xlu1 %658 }
 0x353   :  { %v656_v17 = vpop.xlane.xlu0 %655 }
 0x354   :  { %4114 = vrcp.f32 %v656_v17 }
 0x355   :  { %4116 = vrcp.f32 %v659_v16 }
 0x356   :  { %v4113_v36 = vpop.eup %4112 }
 0x357   :  { %v662_v0 = vpop.xlane.xlu0 %661  ;;  %v683_v19 = vmul.f32 %v4113_v36, %v4097_v57 }
 0x358   :  { %4118 = vrcp.f32 %v662_v0 }
 0x35b   :  { %v665_v15 = vpop.xlane.xlu1 %664 }
 0x35c   :  { %4120 = vrcp.f32 %v665_v15 }
 0x35e   :  { %v4115_v13 = vpop.eup %4114 }
 0x35f   :  { %v668_v38 = vpop.xlane.xlu0 %667  ;;  %v671_v42 = vpop.xlane.xlu1 %670  ;;  %v684_v22 = vmul.f32 %v4115_v13, %v4101_v14 }
 0x360   :  { %v4117_v23 = vpop.eup %4116  ;;  %4122 = vrcp.f32 %v668_v38 }
 0x361   :  { %v691_v18 = vpack.c.bf16 %v684_v22, %v683_v19  ;;  %4124 = vrcp.f32 %v671_v42  ;;  %v685_v21 = vmul.f32 %v4117_v23, %v4624_v44 }
 0x362   :  { %v4119_v20 = vpop.eup %4118 }
 0x363   :  { %v686_v12 = vmul.f32 %v4119_v20, %v4103_v27  ;;  %v674_v59 = vpop.xlane.xlu0 %673  ;;  %3822 = vmatprep.mubr.msk.bf16.mxu1 %vm602_vm3, %v691_v18 }
 0x364   :  { %4126 = vrcp.f32 %v674_v59 }
 0x365   :  { %v692_v43 = vpack.c.bf16 %v686_v12, %v685_v21  ;;  %v827_v0 = vpop.trf.xlu1 }
 0x366   :  { %v4121_v61 = vpop.eup %4120 }
 0x367   :  { %3823 = vmatmul.mubr.msk.bf16.vlgmr.msra.gmra.mrb[8].mxu1 %vm602_vm3, %v692_v43  ;;  %v687_v14 = vmul.f32 %v4121_v61, %v4105_v56  ;;  %v1017_v56 = vsel %vm602_vm3, %v502_v2, 0 }
 0x368   :  { %3831 = vmatpush3.bf16.msra.mxu1 %v4609_v41 }
 0x369   :  { %3832 = vmatprep.subr.bf16.mxu1 %v4607_v39  ;;  %v828_v41 = vpop.trf.xlu1 }
 0x36a   :  { %v4123_v57 = vpop.eup %4122 }
 0x36b   :  { %v688_v62 = vmul.f32 %v4123_v57, %v4109_v29  ;;  %v4125_v63 = vpop.eup %4124 }
 0x36c   :  { %3833 = vmatpush3.bf16.msra.mxu1 %v4607_v39  ;;  %v689_v16 = vmul.f32 %v4125_v63, %v4107_v37  ;;  %v1020_v37 = vsel %vm602_vm3, %v503_v58, 0 }
 0x36d   :  { %v693_v44 = vpack.c.bf16 %v688_v62, %v687_v14  ;;  %4051 = vmatprep.subr.msk.bf16.mxu1 %vm602_vm3, %v502_v2  ;;  %v829_v29 = vpop.trf.xlu1 }
 0x36e   :  { %v4127_v27 = vpop.eup %4126 }
 0x36f   :  { %3826 = vmatprep.mubr.msk.bf16.mxu1 %vm602_vm3, %v693_v44  ;;  %v690_v17 = vmul.f32 %v4127_v27, %v4111_v40 }
 0x371   :  { %v694_v15 = vpack.c.bf16 %v690_v17, %v689_v16  ;;  %v830_v39 = vpop.trf.xlu1 }
 0x373   :  { %3827 = vmatmul.mubr.msk.bf16.gmra.mrb[12].mxu1 %vm602_vm3, %v694_v15 }
 0x374   :  { %3834 = vmatprep.mubr.msk.bf16.mxu1 %vm524_vm2, %v827_v0 }
 0x37b   :  { %3835 = vmatmul.mubr.msk.bf16.vlgmr.msra.gmra.mrb[16].mxu1 %vm524_vm2, %v828_v41 }
 0x37c   :  { %3843 = vmatpush3.bf16.xpose.msra.mxu1 %v1017_v56  ;;  %3838 = vmatprep.mubr.msk.bf16.mxu1 %vm524_vm2, %v829_v29 }
 0x37d   :  { %4052 = vmatprep.subr.msk.bf16.mxu1 %vm602_vm3, %v503_v58 }
 0x383   :  { %3839 = vmatmul.mubr.msk.bf16.gmra.mrb[20].mxu1 %vm524_vm2, %v830_v39 }
 0x384   :  { %3845 = vmatpush3.bf16.xpose.msra.mxu1 %v1020_v37 }
 0x385   :  { %3854 = vmatprep.subr.bf16.mxu1 %v4613_v60 }
 0x43a   :  { %v3824_v40 = vpop.f32.mrb[8].mxu1 }
 0x43b   :  { %v3548_v36 = vpack.c.bf16 %v3824_v40, %v3824_v40  ;;  %v747_v2 = vpop.f32.mrb[9].mxu1 }
 0x43c   :  { %v3546_v13 = vpack.c.bf16 %v747_v2, %v747_v2  ;;  %v3825_v38 = vpop.f32.mrb[10].mxu1 }
 0x43d   :  { %813 = vst.msk [vmem:[#allocation2 + $0x8] sm:$0xf] %vm810_vm4, %v3548_v36  ;;  %v3549_v42 = vpack.c.bf16 %v3825_v38, %v3825_v38  ;;  %v750_v19 = vpop.f32.mrb[11].mxu1 }
 0x43e   :  { %811 = vst.msk [vmem:[#allocation2] sm:$0xf] %vm810_vm4, %v3546_v13  ;;  %v3547_v22 = vpack.c.bf16 %v750_v19, %v750_v19 }
 0x43f   :  { %814 = vst.msk [vmem:[#allocation2 + $0xc] sm:$0xf] %vm810_vm4, %v3549_v42 }
 0x440   :  { %812 = vst.msk [vmem:[#allocation2 + $0x4] sm:$0xf] %vm810_vm4, %v3547_v22 }
 0x446   :  { %v3828_v58 = vpop.f32.mrb[12].mxu1 }
 0x447   :  { %v3552_v23 = vpack.c.bf16 %v3828_v58, %v3828_v58  ;;  %v763_v18 = vpop.f32.mrb[13].mxu1 }
 0x448   :  { %v3550_v20 = vpack.c.bf16 %v763_v18, %v763_v18  ;;  %v3829_v21 = vpop.f32.mrb[14].mxu1 }
 0x449   :  { %817 = vst.msk [vmem:[#allocation2 + $0x18] sm:$0xf] %vm810_vm4, %v3552_v23  ;;  %v3553_v12 = vpack.c.bf16 %v3829_v21, %v3829_v21  ;;  %v766_v59 = vpop.f32.mrb[15].mxu1 }
 0x44a   :  { %815 = vst.msk [vmem:[#allocation2 + $0x10] sm:$0xf] %vm810_vm4, %v3550_v20  ;;  %v3551_v43 = vpack.c.bf16 %v766_v59, %v766_v59 }
 0x44b   :  { %818 = vst.msk [vmem:[#allocation2 + $0x1c] sm:$0xf] %vm810_vm4, %v3553_v12 }
 0x44c   :  { %816 = vst.msk [vmem:[#allocation2 + $0x14] sm:$0xf] %vm810_vm4, %v3551_v43 }
 0x44e   :  { %v3836_v61 = vpop.f32.mrb[16].mxu1 }
 0x44f   :  { %v881_v57 = vpop.f32.mrb[17].mxu1  ;;  %v918_v14 = vsel %vm602_vm3, %v3836_v61, -inf }
 0x450   :  { %919 = vmax.xlane.f32.xlu0 %v918_v14  ;;  %v3837_v62 = vpop.f32.mrb[18].mxu1  ;;  %v912_v44 = vsel %vm602_vm3, %v881_v57, -inf }
 0x451   :  { %v884_v63 = vpop.f32.mrb[19].mxu1  ;;  %v921_v16 = vsel %vm602_vm3, %v3837_v62, -inf }
 0x452   :  { %v915_v41 = vsel %vm602_vm3, %v884_v63, -inf }
 0x454   :  { %913 = vmax.xlane.f32.xlu0 %v912_v44 }
 0x456   :  { %v3840_v27 = vpop.f32.mrb[20].mxu1 }
 0x457   :  { %v897_v17 = vpop.f32.mrb[21].mxu1  ;;  %v930_v56 = vsel %vm602_vm3, %v3840_v27, -inf }
 0x458   :  { %922 = vmax.xlane.f32.xlu0 %v921_v16  ;;  %v3841_v0 = vpop.f32.mrb[22].mxu1  ;;  %v924_v29 = vsel %vm602_vm3, %v897_v17, -inf }
 0x459   :  { %v900_v15 = vpop.f32.mrb[23].mxu1  ;;  %v933_v37 = vsel %vm602_vm3, %v3841_v0, -inf }
 0x45a   :  { %v927_v39 = vsel %vm602_vm3, %v900_v15, -inf }
 0x45c   :  { %916 = vmax.xlane.f32.xlu0 %v915_v41 }
 0x460   :  { %931 = vmax.xlane.f32.xlu0 %v930_v56 }
 0x464   :  { %925 = vmax.xlane.f32.xlu0 %v924_v29 }
 0x468   :  { %928 = vmax.xlane.f32.xlu0 %v927_v39 }
 0x46c   :  { %934 = vmax.xlane.f32.xlu0 %v933_v37 }
 0x4dd   :  { %v920_v40 = vpop.xlane.xlu0 %919 }
 0x4de   :  { %v938_v36 = vsub.f32 %v3836_v61, %v920_v40 }
 0x4e0   :  { %v948_v2 = vmul.f32 1.442695, %v938_v36 }
 0x4e1   :  { %v914_v13 = vpop.xlane.xlu0 %913 }
 0x4e2   :  { %4128 = vpow2.f32 %v948_v2  ;;  %v936_v38 = vsub.f32 %v881_v57, %v914_v13 }
 0x4e4   :  { %v944_v42 = vmul.f32 1.442695, %v936_v38 }
 0x4e5   :  { %v923_v19 = vpop.xlane.xlu0 %922 }
 0x4e6   :  { %4130 = vpow2.f32 %v944_v42  ;;  %v939_v22 = vsub.f32 %v3837_v62, %v923_v19 }
 0x4e8   :  { %v950_v58 = vmul.f32 1.442695, %v939_v22 }
 0x4e9   :  { %v917_v23 = vpop.xlane.xlu0 %916 }
 0x4ea   :  { %4132 = vpow2.f32 %v950_v58  ;;  %v937_v18 = vsub.f32 %v884_v63, %v917_v23  ;;  %v4696_v58 = vld [vmem:[%s5563_s1 + $0xa0] sm:$0xff]   ;;  %v4701_v23 = vld [vmem:[%s5563_s1 + $0xa8] sm:$0xff]  }
 0x4eb   :  { %3798 = vmatprep.mubr.msk.bf16.mxu0 %vm182_vm1, %v4696_v58 }
 0x4ec   :  { %v4676_v20 = vpop.eup %4128  ;;  %v946_v21 = vmul.f32 1.442695, %v937_v18  ;;  %3799 = vmatmul.mubr.msk.bf16.gmra.mrb[40].mxu0 %vm182_vm1, %v4701_v23  ;;  %v4710_v18 = vld [vmem:[%s5563_s1 + $0xb0] sm:$0xff]  }
 0x4ed   :  { %v932_v12 = vpop.xlane.xlu0 %931  ;;  %v966_v59 = vsel %vm602_vm3, %v4676_v20, 0.0  ;;  %3802 = vmatprep.mubr.msk.bf16.mxu0 %vm182_vm1, %v4710_v18 }
 0x4ee   :  { %4134 = vpow2.f32 %v946_v21  ;;  %967 = vadd.xlane.f32.xlu0 %v966_v59  ;;  %v942_v61 = vsub.f32 %v3840_v27, %v932_v12  ;;  %v4715_v21 = vld [vmem:[%s5563_s1 + $0xb8] sm:$0xff]   ;;  %v5567_v12 = vpack.c.bf16 %v4491_v28, %v4485_v25  ;;  %v5568_v59 = vpack.c.bf16 %v4487_v26, %v4483_v24 }
 0x4f0   :  { %v4680_v43 = vpop.eup %4130  ;;  %v956_v63 = vmul.f32 1.442695, %v942_v61 }
 0x4f1   :  { %v926_v57 = vpop.xlane.xlu0 %925  ;;  %v960_v14 = vsel %vm602_vm3, %v4680_v43, 0.0 }
 0x4f2   :  { %v940_v62 = vsub.f32 %v897_v17, %v926_v57  ;;  %961 = vadd.xlane.f32.xlu0 %v960_v14 }
 0x4f4   :  { %v4133_v44 = vpop.eup %4132  ;;  %v952_v16 = vmul.f32 1.442695, %v940_v62  ;;  %3803 = vmatmul.mubr.msk.bf16.gmra.mrb[44].mxu0 %vm182_vm1, %v4715_v21 }
 0x4f5   :  { %v929_v41 = vpop.xlane.xlu0 %928  ;;  %v969_v56 = vsel %vm602_vm3, %v4133_v44, 0.0 }
 0x4f6   :  { %4136 = vpow2.f32 %v952_v16  ;;  %v941_v29 = vsub.f32 %v900_v15, %v929_v41  ;;  %970 = vadd.xlane.f32.xlu0 %v969_v56 }
 0x4f7   :  { %4138 = vpow2.f32 %v956_v63 }
 0x4f8   :  { %v4135_v39 = vpop.eup %4134  ;;  %v954_v37 = vmul.f32 1.442695, %v941_v29 }
 0x4f9   :  { %v935_v40 = vpop.xlane.xlu0 %934  ;;  %v963_v27 = vsel %vm602_vm3, %v4135_v39, 0.0 }
 0x4fa   :  { %4140 = vpow2.f32 %v954_v37  ;;  %v943_v36 = vsub.f32 %v3841_v0, %v935_v40  ;;  %964 = vadd.xlane.f32.xlu0 %v963_v27 }
 0x4fc   :  { %v958_v17 = vmul.f32 1.442695, %v943_v36 }
 0x4fe   :  { %4142 = vpow2.f32 %v958_v17 }
 0x500   :  { %v4137_v2 = vpop.eup %4136 }
 0x501   :  { %v972_v13 = vsel %vm602_vm3, %v4137_v2, 0.0  ;;  %v4687_v38 = vpop.eup %4138 }
 0x502   :  { %973 = vadd.xlane.f32.xlu0 %v972_v13  ;;  %v978_v15 = vsel %vm602_vm3, %v4687_v38, 0.0 }
 0x504   :  { %v4141_v42 = vpop.eup %4140 }
 0x505   :  { %v975_v19 = vsel %vm602_vm3, %v4141_v42, 0.0 }
 0x506   :  { %979 = vadd.xlane.f32.xlu0 %v978_v15  ;;  %976 = vadd.xlane.f32.xlu1 %v975_v19 }
 0x508   :  { %v4143_v22 = vpop.eup %4142 }
 0x509   :  { %v981_v0 = vsel %vm602_vm3, %v4143_v22, 0.0 }
 0x50a   :  { %982 = vadd.xlane.f32.xlu0 %v981_v0 }
 0x533   :  { %1469 = vxpose.xlu1.c.b16.start [1/2] (short) (narrow) %v490_v35, 64 }
 0x537   :  { %1470 = vxpose.xlu1.c.b16.end [2/2] (short) (narrow) %v491_v33, 64  ;;  %1144 = vxpose.xlu0.c.b16.start [1/2] (short) (narrow) %v5567_v12, 64 }
 0x53b   :  { %1145 = vxpose.xlu0.c.b16.end [2/2] (short) (narrow) %v5568_v59, 64 }
 0x57b   :  { %v968_v61 = vpop.xlane.xlu0 %967 }
 0x57f   :  { %v962_v57 = vpop.xlane.xlu0 %961 }
 0x583   :  { %v971_v14 = vpop.xlane.xlu0 %970 }
 0x584   :  { %4144 = vrcp.f32 %v971_v14 }
 0x585   :  { %4146 = vrcp.f32 %v962_v57 }
 0x586   :  { %4148 = vrcp.f32 %v968_v61 }
 0x587   :  { %v965_v31 = vpop.xlane.xlu0 %964 }
 0x588   :  { %4150 = vrcp.f32 %v965_v31 }
 0x58e   :  { %v4145_v34 = vpop.eup %4144 }
 0x58f   :  { %v974_v35 = vpop.xlane.xlu0 %973  ;;  %v4147_v30 = vpop.eup %4146  ;;  %v995_v62 = vmul.f32 %v4145_v34, %v4133_v44 }
 0x590   :  { %v4149_v32 = vpop.eup %4148  ;;  %4152 = vrcp.f32 %v974_v35  ;;  %v992_v24 = vmul.f32 %v4147_v30, %v4680_v43 }
 0x591   :  { %v994_v63 = vmul.f32 %v4149_v32, %v4676_v20 }
 0x592   :  { %v4151_v33 = vpop.eup %4150 }
 0x593   :  { %v977_v25 = vpop.xlane.xlu1 %976  ;;  %v980_v28 = vpop.xlane.xlu0 %979  ;;  %v993_v26 = vmul.f32 %v4151_v33, %v4135_v39  ;;  %v1001_v41 = vpack.c.bf16 %v995_v62, %v994_v63  ;;  %v3457_v62 = vld [vmem:[%s5562_s0 + $0x4] sm:$0xf]  ;;  %s4376_s0 = smov 32  }
 0x594   :  { %4154 = vrcp.f32 %v977_v25  ;;  %4057 = vmatprep.subr.msk.bf16.mxu0 %vm255_vm0, %v3457_v62  ;;  %v1797_v25 = vsel %vm255_vm0, %v3457_v62, 0 }
 0x595   :  { %v1000_v16 = vpack.c.bf16 %v993_v26, %v992_v24  ;;  %4156 = vrcp.f32 %v980_v28 }
 0x597   :  { %3846 = vmatprep.mubr.msk.bf16.mxu1 %vm602_vm3, %v1000_v16  ;;  %v983_v56 = vpop.xlane.xlu0 %982 }
 0x598   :  { %4158 = vrcp.f32 %v983_v56  ;;  %3847 = vmatmul.mubr.msk.bf16.vlgmr.msra.gmra.mrb[24].mxu1 %vm602_vm3, %v1001_v41 }
 0x599   :  { %3855 = vmatpush3.bf16.msra.mxu1 %v4613_v60  ;;  %v1477_v44 = vpop.trf.xlu1 }
 0x59a   :  { %3856 = vmatprep.subr.bf16.mxu1 %v4611_v45  ;;  %3882 = vmatprep.mubr.msk.bf16.mxu0 %vm524_vm2, %v1477_v44  ;;  %v4153_v43 = vpop.eup %4152 }
 0x59b   :  { %v996_v39 = vmul.f32 %v4153_v43, %v4137_v2 }
 0x59d   :  { %3857 = vmatpush3.bf16.msra.mxu1 %v4611_v45  ;;  %v1478_v20 = vpop.trf.xlu1  ;;  %v1152_v13 = vpop.trf.xlu0 }
 0x59e   :  { %v4155_v29 = vpop.eup %4154  ;;  %3883 = vmatmul.mubr.msk.bf16.vlgmr.msra.gmra.mrb[48].mxu0 %vm524_vm2, %v1478_v20 }
 0x59f   :  { %v997_v37 = vmul.f32 %v4155_v29, %v4141_v42  ;;  %v4157_v40 = vpop.eup %4156  ;;  %3903 = vmatpush3.bf16.msra.mxu0 %v1797_v25 }
 0x5a0   :  { %v998_v60 = vmul.f32 %v4157_v40, %v4687_v38 }
 0x5a1   :  { %v1002_v27 = vpack.c.bf16 %v997_v37, %v996_v39  ;;  %v1479_v36 = vpop.trf.xlu1  ;;  %v1153_v2 = vpop.trf.xlu0 }
 0x5a2   :  { %v4159_v17 = vpop.eup %4158  ;;  %3886 = vmatprep.mubr.msk.bf16.mxu0 %vm524_vm2, %v1479_v36 }
 0x5a3   :  { %3850 = vmatprep.mubr.msk.bf16.mxu1 %vm602_vm3, %v1002_v27  ;;  %v999_v15 = vmul.f32 %v4159_v17, %v4143_v22 }
 0x5a5   :  { %v1003_v19 = vpack.c.bf16 %v999_v15, %v998_v60  ;;  %v1480_v45 = vpop.trf.xlu1  ;;  %v1154_v42 = vpop.trf.xlu0 }
 0x5a6   :  { %3887 = vmatmul.mubr.msk.bf16.gmra.mrb[52].mxu0 %vm524_vm2, %v1480_v45 }
 0x5a7   :  { %3851 = vmatmul.mubr.msk.bf16.gmra.mrb[28].mxu1 %vm602_vm3, %v1003_v19  ;;  %3904 = vmatprep.mubr.msk.bf16.mxu0 %vm182_vm1, %v4402_v1 }
 0x5a8   :  { %3858 = vmatprep.mubr.msk.bf16.mxu1 %vm524_vm2, %v1152_v13 }
 0x5a9   :  { %v1155_v0 = vpop.trf.xlu0 }
 0x5ae   :  { %3905 = vmatmul.mubr.msk.bf16.vlgmr.msra.gmra.mrb[56].mxu0 %vm182_vm1, %v4411_v3 }
 0x5af   :  { %3859 = vmatmul.mubr.msk.bf16.vlgmr.msra.gmra.mrb[32].mxu1 %vm524_vm2, %v1153_v2  ;;  %3908 = vmatprep.mubr.msk.bf16.mxu0 %vm182_vm1, %v4416_v4 }
 0x5b0   :  { %3862 = vmatprep.mubr.msk.bf16.mxu1 %vm524_vm2, %v1154_v42 }
 0x5b6   :  { %3909 = vmatmul.mubr.msk.bf16.gmra.mrb[60].mxu0 %vm182_vm1, %v4425_v5 }
 0x5b7   :  { %3863 = vmatmul.mubr.msk.bf16.gmra.mrb[36].mxu1 %vm524_vm2, %v1155_v0  ;;  %3912 = vmatprep.mubr.msk.bf16.mxu0 %vm182_vm1, %v4430_v6 }
 0x5be   :  { %3913 = vmatmul.mubr.msk.bf16.gmra.mrb[64].mxu0 %vm182_vm1, %v4439_v7 }
 0x5bf   :  { %v3800_v38 = vpop.f32.mrb[40].mxu0  ;;  %3916 = vmatprep.mubr.msk.bf16.mxu0 %vm182_vm1, %v4444_v8 }
 0x5c0   :  { %v453_v22 = vpop.f32.mrb[41].mxu0 }
 0x5c1   :  { %v3801_v12 = vpop.f32.mrb[42].mxu0 }
 0x5c2   :  { %v505_v59 = vpack.c.bf16 %v3801_v12, %v3800_v38  ;;  %v456_v61 = vpop.f32.mrb[43].mxu0 }
 0x5c3   :  { %v504_v57 = vpack.c.bf16 %v456_v61, %v453_v22 }
 0x5c4   :  { %v1345_v1 = vsel %vm602_vm3, %v505_v59, 0 }
 0x5c5   :  { %v1342_v14 = vsel %vm602_vm3, %v504_v57, 0  ;;  %4053 = vmatprep.subr.msk.bf16.mxu1 %vm602_vm3, %v504_v57 }
 0x5c6   :  { %3867 = vmatpush3.bf16.xpose.msra.mxu1 %v1342_v14  ;;  %3917 = vmatmul.mubr.msk.bf16.gmra.mrb[68].mxu0 %vm182_vm1, %v4453_v9 }
 0x5c7   :  { %4054 = vmatprep.subr.msk.bf16.mxu1 %vm602_vm3, %v505_v59  ;;  %v3804_v31 = vpop.f32.mrb[44].mxu0  ;;  %3920 = vmatprep.mubr.msk.bf16.mxu0 %vm182_vm1, %v4458_v10 }
 0x5c8   :  { %v469_v34 = vpop.f32.mrb[45].mxu0 }
 0x5c9   :  { %v3805_v35 = vpop.f32.mrb[46].mxu0 }
 0x5ca   :  { %v4757_v30 = vpack.c.bf16 %v3805_v35, %v3804_v31  ;;  %v472_v32 = vpop.f32.mrb[47].mxu0 }
 0x5cb   :  { %v4759_v33 = vpack.c.bf16 %v472_v32, %v469_v34 }
 0x5ce   :  { %3869 = vmatpush3.bf16.xpose.msra.mxu1 %v1345_v1  ;;  %3921 = vmatmul.mubr.msk.bf16.gmra.mrb[72].mxu0 %vm182_vm1, %v4467_v11 }
 0x5cf   :  { %4055 = vmatprep.subr.msk.bf16.mxu1 %vm602_vm3, %v4759_v33  ;;  %3924 = vmatprep.mubr.msk.bf16.mxu0 %vm182_vm1, %v4514_v46 }
 0x5d6   :  { %3925 = vmatmul.mubr.msk.bf16.gmra.mrb[76].mxu0 %vm182_vm1, %v4519_v47 }
 0x5d7   :  { %3928 = vmatprep.mubr.msk.bf16.mxu0 %vm182_vm1, %v4524_v48 }
 0x5de   :  { %3929 = vmatmul.mubr.msk.bf16.gmra.mrb[80].mxu0 %vm182_vm1, %v4535_v49 }
 0x5df   :  { %3932 = vmatprep.mubr.msk.bf16.mxu0 %vm182_vm1, %v4540_v50 }
 0x5e6   :  { %3933 = vmatmul.mubr.msk.bf16.gmra.mrb[84].mxu0 %vm182_vm1, %v4549_v51 }
 0x5e7   :  { %3936 = vmatprep.mubr.msk.bf16.mxu0 %vm182_vm1, %v4554_v52 }
 0x5ee   :  { %3937 = vmatmul.mubr.msk.bf16.gmra.mrb[88].mxu0 %vm182_vm1, %v4563_v53 }
 0x5ef   :  { %3940 = vmatprep.mubr.msk.bf16.mxu0 %vm182_vm1, %v4568_v54 }
 0x5f6   :  { %3941 = vmatmul.mubr.msk.bf16.gmra.mrb[92].mxu0 %vm182_vm1, %v4577_v55 }
 0x5f7   :  { %3944 = vmatprep.mubr.msk.bf16.mxu0 %vm182_vm1, %v4696_v58 }
 0x5fe   :  { %3945 = vmatmul.mubr.msk.bf16.gmra.mrb[96].mxu0 %vm182_vm1, %v4701_v23 }
 0x5ff   :  { %3948 = vmatprep.mubr.msk.bf16.mxu0 %vm182_vm1, %v4710_v18 }
 0x606   :  { %3949 = vmatmul.mubr.msk.bf16.gmra.mrb[100].mxu0 %vm182_vm1, %v4715_v21 }
 0x66b   :  { %v4812_v3 = vpop.f32.mrb[24].mxu1 }
 0x66c   :  { %v4814_v4 = vpop.f32.mrb[25].mxu1 }
 0x66d   :  { %v4816_v5 = vpop.f32.mrb[26].mxu1 }
 0x66e   :  { %v4818_v6 = vpop.f32.mrb[27].mxu1 }
 0x671   :  { %v4822_v7 = vpop.f32.mrb[48].mxu0 }
 0x672   :  { %v4824_v8 = vpop.f32.mrb[49].mxu0  ;;  %v1568_v37 = vsel %vm602_vm3, %v4822_v7, -inf }
 0x673   :  { %v4826_v9 = vpop.f32.mrb[50].mxu0  ;;  %v1562_v29 = vsel %vm602_vm3, %v4824_v8, -inf }
 0x674   :  { %v4828_v10 = vpop.f32.mrb[51].mxu0  ;;  %v1571_v39 = vsel %vm602_vm3, %v4826_v9, -inf }
 0x675   :  { %v1565_v20 = vsel %vm602_vm3, %v4828_v10, -inf }
 0x679   :  { %v4830_v11 = vpop.f32.mrb[52].mxu0 }
 0x67a   :  { %v4832_v46 = vpop.f32.mrb[28].mxu1  ;;  %v4834_v47 = vpop.f32.mrb[53].mxu0  ;;  %v1580_v17 = vsel %vm602_vm3, %v4830_v11, -inf }
 0x67b   :  { %v4836_v48 = vpop.f32.mrb[29].mxu1  ;;  %v4838_v49 = vpop.f32.mrb[54].mxu0  ;;  %v1574_v27 = vsel %vm602_vm3, %v4834_v47, -inf }
 0x67c   :  { %v4840_v50 = vpop.f32.mrb[30].mxu1  ;;  %v4842_v51 = vpop.f32.mrb[55].mxu0  ;;  %v1583_v36 = vsel %vm602_vm3, %v4838_v49, -inf }
 0x67d   :  { %v4844_v52 = vpop.f32.mrb[31].mxu1  ;;  %v1577_v40 = vsel %vm602_vm3, %v4842_v51, -inf }
 0x681   :  { %v4876_v13 = vpop.f32.mrb[56].mxu0 }
 0x682   :  { %v3860_v53 = vpop.f32.mrb[32].mxu1  ;;  %v4878_v60 = vpop.f32.mrb[57].mxu0 }
 0x683   :  { %v1206_v54 = vpop.f32.mrb[33].mxu1  ;;  %v1243_v21 = vsel %vm602_vm3, %v3860_v53, -inf  ;;  %v4880_v15 = vpop.f32.mrb[58].mxu0 }
 0x684   :  { %v3861_v55 = vpop.f32.mrb[34].mxu1  ;;  %v1237_v58 = vsel %vm602_vm3, %v1206_v54, -inf  ;;  %v2025_v19 = vpack.c.bf16 %v4880_v15, %v4876_v13  ;;  %v4884_v45 = vpop.f32.mrb[59].mxu0 }
 0x685   :  { %1238 = vmax.xlane.f32.xlu0 %v1237_v58  ;;  %v1209_v23 = vpop.f32.mrb[35].mxu1  ;;  %v1246_v63 = vsel %vm602_vm3, %v3861_v55, -inf  ;;  %v2024_v2 = vpack.c.bf16 %v4884_v45, %v4878_v60 }
 0x686   :  { %v1240_v18 = vsel %vm602_vm3, %v1209_v23, -inf }
 0x687   :  { %1241 = vmax.xlane.f32.xlu1 %v1240_v18 }
 0x689   :  { %1244 = vmax.xlane.f32.xlu0 %v1243_v21 }
 0x68a   :  { %v4849_v28 = vpop.f32.mrb[36].mxu1 }
 0x68b   :  { %v1222_v24 = vpop.f32.mrb[37].mxu1  ;;  %v1255_v43 = vsel %vm602_vm3, %v4849_v28, -inf }
 0x68c   :  { %v4851_v26 = vpop.f32.mrb[38].mxu1  ;;  %v1249_v56 = vsel %vm602_vm3, %v1222_v24, -inf }
 0x68d   :  { %1247 = vmax.xlane.f32.xlu0 %v1246_v63  ;;  %v1225_v16 = vpop.f32.mrb[39].mxu1  ;;  %v1258_v44 = vsel %vm602_vm3, %v4851_v26, -inf }
 0x68e   :  { %v1252_v41 = vsel %vm602_vm3, %v1225_v16, -inf }
 0x68f   :  { %1253 = vmax.xlane.f32.xlu1 %v1252_v41 }
 0x691   :  { %1250 = vmax.xlane.f32.xlu0 %v1249_v56 }
 0x693   :  { %1259 = vmax.xlane.f32.xlu1 %v1258_v44 }
 0x695   :  { %1256 = vmax.xlane.f32.xlu0 %v1255_v43 }
 0x697   :  { %1566 = vmax.xlane.f32.xlu1 %v1565_v20 }
 0x699   :  { %1563 = vmax.xlane.f32.xlu0 %v1562_v29 }
 0x69b   :  { %1572 = vmax.xlane.f32.xlu1 %v1571_v39 }
 0x69d   :  { %1569 = vmax.xlane.f32.xlu0 %v1568_v37 }
 0x69f   :  { %1578 = vmax.xlane.f32.xlu1 %v1577_v40 }
 0x6a1   :  { %1575 = vmax.xlane.f32.xlu0 %v1574_v27 }
 0x6a3   :  { %1584 = vmax.xlane.f32.xlu1 %v1583_v36 }
 0x6a5   :  { %1581 = vmax.xlane.f32.xlu0 %v1580_v17 }
 0x712   :  { %v1239_v42 = vpop.xlane.xlu0 %1238 }
 0x713   :  { %v1261_v0 = vsub.f32 %v1206_v54, %v1239_v42 }
 0x714   :  { %v1242_v38 = vpop.xlane.xlu1 %1241 }
 0x715   :  { %v1269_v22 = vmul.f32 1.442695, %v1261_v0  ;;  %v1262_v12 = vsub.f32 %v1209_v23, %v1242_v38 }
 0x716   :  { %v1245_v59 = vpop.xlane.xlu0 %1244 }
 0x717   :  { %4160 = vpow2.f32 %v1269_v22  ;;  %v1271_v61 = vmul.f32 1.442695, %v1262_v12  ;;  %v1263_v57 = vsub.f32 %v3860_v53, %v1245_v59 }
 0x719   :  { %4162 = vpow2.f32 %v1271_v61  ;;  %v1273_v14 = vmul.f32 1.442695, %v1263_v57 }
 0x71a   :  { %v1248_v1 = vpop.xlane.xlu0 %1247 }
 0x71b   :  { %4164 = vpow2.f32 %v1273_v14  ;;  %v1264_v31 = vsub.f32 %v3861_v55, %v1248_v1 }
 0x71c   :  { %v1254_v34 = vpop.xlane.xlu1 %1253 }
 0x71d   :  { %v1275_v35 = vmul.f32 1.442695, %v1264_v31  ;;  %v1266_v32 = vsub.f32 %v1225_v16, %v1254_v34 }
 0x71e   :  { %v1251_v62 = vpop.xlane.xlu0 %1250 }
 0x71f   :  { %4166 = vpow2.f32 %v1275_v35  ;;  %v1279_v25 = vmul.f32 1.442695, %v1266_v32  ;;  %v1265_v58 = vsub.f32 %v1222_v24, %v1251_v62 }
 0x720   :  { %v1260_v54 = vpop.xlane.xlu1 %1259 }
 0x721   :  { %v4888_v18 = vpop.eup %4160  ;;  %4168 = vpow2.f32 %v1279_v25  ;;  %v1277_v23 = vmul.f32 1.442695, %v1265_v58  ;;  %v1268_v21 = vsub.f32 %v4851_v26, %v1260_v54 }
 0x722   :  { %v1257_v53 = vpop.xlane.xlu0 %1256  ;;  %v1285_v63 = vsel %vm602_vm3, %v4888_v18, 0.0 }
 0x723   :  { %v4893_v41 = vpop.eup %4162  ;;  %4170 = vpow2.f32 %v1277_v23  ;;  %v1283_v55 = vmul.f32 1.442695, %v1268_v21  ;;  %v1267_v16 = vsub.f32 %v4849_v28, %v1257_v53  ;;  %1286 = vadd.xlane.f32.xlu0 %v1285_v63 }
 0x724   :  { %v1567_v56 = vpop.xlane.xlu1 %1566  ;;  %v1288_v24 = vsel %vm602_vm3, %v4893_v41, 0.0 }
 0x725   :  { %v4898_v44 = vpop.eup %4164  ;;  %4172 = vpow2.f32 %v1283_v55  ;;  %v1281_v43 = vmul.f32 1.442695, %v1267_v16  ;;  %v1587_v26 = vsub.f32 %v4828_v10, %v1567_v56  ;;  %1289 = vadd.xlane.f32.xlu1 %v1288_v24 }
 0x726   :  { %v1564_v20 = vpop.xlane.xlu0 %1563  ;;  %v1291_v29 = vsel %vm602_vm3, %v4898_v44, 0.0 }
 0x727   :  { %4174 = vpow2.f32 %v1281_v43  ;;  %v1596_v39 = vmul.f32 1.442695, %v1587_v26  ;;  %v1586_v28 = vsub.f32 %v4824_v8, %v1564_v20  ;;  %1292 = vadd.xlane.f32.xlu0 %v1291_v29  ;;  %v4956_v29 = vpop.f32.mrb[60].mxu0 }
 0x728   :  { %v1573_v37 = vpop.xlane.xlu1 %1572 }
 0x729   :  { %v4904_v40 = vpop.eup %4166  ;;  %4176 = vpow2.f32 %v1596_v39  ;;  %v1594_v27 = vmul.f32 1.442695, %v1586_v28  ;;  %v1589_v36 = vsub.f32 %v4826_v9, %v1573_v37  ;;  %v4960_v28 = vpop.f32.mrb[61].mxu0 }
 0x72a   :  { %v1570_v17 = vpop.xlane.xlu0 %1569  ;;  %v1294_v10 = vsel %vm602_vm3, %v4904_v40, 0.0 }
 0x72b   :  { %v4909_v42 = vpop.eup %4168  ;;  %4178 = vpow2.f32 %v1594_v27  ;;  %v1600_v0 = vmul.f32 1.442695, %v1589_v36  ;;  %v1588_v38 = vsub.f32 %v4822_v7, %v1570_v17  ;;  %1295 = vadd.xlane.f32.xlu1 %v1294_v10  ;;  %v4966_v36 = vpop.f32.mrb[62].mxu0 }
 0x72c   :  { %v1579_v8 = vpop.xlane.xlu1 %1578  ;;  %v1300_v57 = vsel %vm602_vm3, %v4909_v42, 0.0  ;;  %v4970_v10 = vpop.f32.mrb[63].mxu0 }
 0x72d   :  { %v4912_v22 = vpop.eup %4170  ;;  %4180 = vpow2.f32 %v1600_v0  ;;  %v1598_v12 = vmul.f32 1.442695, %v1588_v38  ;;  %v1591_v59 = vsub.f32 %v4842_v51, %v1579_v8  ;;  %v4974_v38 = vpop.f32.mrb[64].mxu0 }
 0x72e   :  { %v1576_v61 = vpop.xlane.xlu0 %1575  ;;  %v1297_v9 = vsel %vm602_vm3, %v4912_v22, 0.0  ;;  %v4976_v8 = vpop.f32.mrb[65].mxu0 }
 0x72f   :  { %v4919_v14 = vpop.eup %4172  ;;  %4182 = vpow2.f32 %v1598_v12  ;;  %v1604_v1 = vmul.f32 1.442695, %v1591_v59  ;;  %v1590_v7 = vsub.f32 %v4834_v47, %v1576_v61  ;;  %1298 = vadd.xlane.f32.xlu0 %v1297_v9  ;;  %1301 = vadd.xlane.f32.xlu1 %v1300_v57  ;;  %v4978_v12 = vpop.f32.mrb[66].mxu0 }
 0x730   :  { %v1585_v31 = vpop.xlane.xlu1 %1584  ;;  %v1306_v25 = vsel %vm602_vm3, %v4919_v14, 0.0  ;;  %v4982_v61 = vpop.f32.mrb[67].mxu0 }
 0x731   :  { %v4922_v34 = vpop.eup %4174  ;;  %4184 = vpow2.f32 %v1604_v1  ;;  %v1602_v51 = vmul.f32 1.442695, %v1590_v7  ;;  %v1593_v35 = vsub.f32 %v4838_v49, %v1585_v31  ;;  %v4986_v57 = vpop.f32.mrb[68].mxu0 }
 0x732   :  { %v1582_v32 = vpop.xlane.xlu0 %1581  ;;  %v1303_v62 = vsel %vm602_vm3, %v4922_v34, 0.0  ;;  %v4988_v1 = vpop.f32.mrb[69].mxu0 }
 0x733   :  { %v4929_v58 = vpop.eup %4176  ;;  %4186 = vpow2.f32 %v1602_v51  ;;  %v1608_v47 = vmul.f32 1.442695, %v1593_v35  ;;  %v1592_v54 = vsub.f32 %v4830_v11, %v1582_v32  ;;  %1304 = vadd.xlane.f32.xlu0 %v1303_v62  ;;  %1307 = vadd.xlane.f32.xlu1 %v1306_v25  ;;  %v4990_v7 = vpop.f32.mrb[70].mxu0 }
 0x734   :  { %v1613_v53 = vsel %vm602_vm3, %v4929_v58, 0.0  ;;  %v4992_v31 = vpop.f32.mrb[71].mxu0 }
 0x735   :  { %v4932_v23 = vpop.eup %4178  ;;  %4188 = vpow2.f32 %v1608_v47  ;;  %v1606_v21 = vmul.f32 1.442695, %v1592_v54  ;;  %v3922_v51 = vpop.f32.mrb[72].mxu0 }
 0x736   :  { %v1610_v49 = vsel %vm602_vm3, %v4932_v23, 0.0  ;;  %v1897_v62 = vpop.f32.mrb[73].mxu0 }
 0x737   :  { %v4938_v63 = vpop.eup %4180  ;;  %4190 = vpow2.f32 %v1606_v21  ;;  %1611 = vadd.xlane.f32.xlu0 %v1610_v49  ;;  %1614 = vadd.xlane.f32.xlu1 %v1613_v53  ;;  %v3923_v25 = vpop.f32.mrb[74].mxu0 }
 0x738   :  { %v1619_v16 = vsel %vm602_vm3, %v4938_v63, 0.0  ;;  %v4998_v47 = vpack.c.bf16 %v3923_v25, %v3922_v51  ;;  %v1900_v54 = vpop.f32.mrb[75].mxu0 }
 0x739   :  { %v4940_v55 = vpop.eup %4182  ;;  %v5000_v21 = vpack.c.bf16 %v1900_v54, %v1897_v62 }
 0x73a   :  { %v1616_v11 = vsel %vm602_vm3, %v4940_v55, 0.0 }
 0x73b   :  { %v4946_v56 = vpop.eup %4184  ;;  %1617 = vadd.xlane.f32.xlu0 %v1616_v11  ;;  %1620 = vadd.xlane.f32.xlu1 %v1619_v16 }
 0x73c   :  { %v1625_v26 = vsel %vm602_vm3, %v4946_v56, 0.0 }
 0x73d   :  { %v4948_v24 = vpop.eup %4186 }
 0x73e   :  { %v1622_v43 = vsel %vm602_vm3, %v4948_v24, 0.0 }
 0x73f   :  { %v4954_v20 = vpop.eup %4188  ;;  %1623 = vadd.xlane.f32.xlu0 %v1622_v43  ;;  %1626 = vadd.xlane.f32.xlu1 %v1625_v26 }
 0x740   :  { %v1631_v27 = vsel %vm602_vm3, %v4954_v20, 0.0 }
 0x741   :  { %v4958_v39 = vpop.eup %4190 }
 0x742   :  { %v1628_v37 = vsel %vm602_vm3, %v4958_v39, 0.0 }
 0x743   :  { %1629 = vadd.xlane.f32.xlu0 %v1628_v37  ;;  %1632 = vadd.xlane.f32.xlu1 %v1631_v27 }
 0x770   :  { %2048 = vxpose.xlu0.c.b16.start [1/2] (short) (narrow) %v2024_v2, 64 }
 0x774   :  { %2049 = vxpose.xlu0.c.b16.end [2/2] (short) (narrow) %v2025_v19, 64 }
 0x7b0   :  { %v1287_v49 = vpop.xlane.xlu0 %1286 }
 0x7b1   :  { %4192 = vrcp.f32 %v1287_v49 }
 0x7b2   :  { %v1290_v53 = vpop.xlane.xlu1 %1289 }
 0x7b3   :  { %4194 = vrcp.f32 %v1290_v53 }
 0x7b4   :  { %v1293_v11 = vpop.xlane.xlu0 %1292 }
 0x7b5   :  { %4196 = vrcp.f32 %v1293_v11  ;;  %v1667_v11 = vsel %vm602_vm3, %v4759_v33, 0 }
 0x7b8   :  { %v1296_v16 = vpop.xlane.xlu1 %1295 }
 0x7b9   :  { %4198 = vrcp.f32 %v1296_v16 }
 0x7bb   :  { %v4193_v43 = vpop.eup %4192 }
 0x7bc   :  { %v1299_v26 = vpop.xlane.xlu0 %1298  ;;  %v1302_v37 = vpop.xlane.xlu1 %1301  ;;  %v1317_v60 = vmul.f32 %v4193_v43, %v4888_v18 }
 0x7bd   :  { %v4195_v27 = vpop.eup %4194  ;;  %4200 = vrcp.f32 %v1299_v26 }
 0x7be   :  { %4202 = vrcp.f32 %v1302_v37  ;;  %v1318_v45 = vmul.f32 %v4195_v27, %v4893_v41 }
 0x7bf   :  { %v4197_v2 = vpop.eup %4196 }
 0x7c0   :  { %v1305_v13 = vpop.xlane.xlu0 %1304  ;;  %v1308_v15 = vpop.xlane.xlu1 %1307  ;;  %v1325_v19 = vpack.c.bf16 %v1318_v45, %v1317_v60  ;;  %v1319_v62 = vmul.f32 %v4197_v2, %v4898_v44 }
 0x7c1   :  { %4204 = vrcp.f32 %v1305_v13 }
 0x7c2   :  { %4206 = vrcp.f32 %v1308_v15  ;;  %3870 = vmatprep.mubr.msk.bf16.mxu1 %vm602_vm3, %v1325_v19 }
 0x7c3   :  { %v4199_v51 = vpop.eup %4198 }
 0x7c4   :  { %v1320_v25 = vmul.f32 %v4199_v51, %v4904_v40  ;;  %v1612_v54 = vpop.xlane.xlu0 %1611  ;;  %v1615_v49 = vpop.xlane.xlu1 %1614 }
 0x7c5   :  { %4208 = vrcp.f32 %v1612_v54 }
 0x7c6   :  { %v1326_v53 = vpack.c.bf16 %v1320_v25, %v1319_v62  ;;  %4210 = vrcp.f32 %v1615_v49  ;;  %v1670_v62 = vsel %vm602_vm3, %v4757_v30, 0 }
 0x7c7   :  { %v4201_v18 = vpop.eup %4200 }
 0x7c8   :  { %v4203_v41 = vpop.eup %4202  ;;  %v1618_v16 = vpop.xlane.xlu0 %1617  ;;  %3871 = vmatmul.mubr.msk.bf16.vlgmr.msra.gmra.mrb[40].mxu1 %vm602_vm3, %v1326_v53  ;;  %v1321_v26 = vmul.f32 %v4201_v18, %v4912_v22 }
 0x7c9   :  { %v1621_v43 = vpop.xlane.xlu1 %1620  ;;  %4212 = vrcp.f32 %v1618_v16  ;;  %3891 = vmatpush3.bf16.xpose.msra.mxu1 %v1667_v11  ;;  %v1322_v44 = vmul.f32 %v4203_v41, %v4909_v42 }
 0x7ca   :  { %4214 = vrcp.f32 %v1621_v43  ;;  %4056 = vmatprep.subr.msk.bf16.mxu1 %vm602_vm3, %v4757_v30 }
 0x7cb   :  { %v4205_v40 = vpop.eup %4204  ;;  %v1327_v37 = vpack.c.bf16 %v1322_v44, %v1321_v26 }
 0x7cc   :  { %v4207_v27 = vpop.eup %4206  ;;  %v1624_v60 = vpop.xlane.xlu0 %1623  ;;  %v1323_v33 = vmul.f32 %v4205_v40, %v4922_v34 }
 0x7cd   :  { %v1627_v45 = vpop.xlane.xlu1 %1626  ;;  %4216 = vrcp.f32 %v1624_v60  ;;  %3874 = vmatprep.mubr.msk.bf16.mxu1 %vm602_vm3, %v1327_v37  ;;  %v1324_v22 = vmul.f32 %v4207_v27, %v4919_v14 }
 0x7ce   :  { %4218 = vrcp.f32 %v1627_v45 }
 0x7cf   :  { %v4209_v13 = vpop.eup %4208  ;;  %v1328_v15 = vpack.c.bf16 %v1324_v22, %v1323_v33 }
 0x7d0   :  { %v4211_v42 = vpop.eup %4210  ;;  %v1630_v19 = vpop.xlane.xlu0 %1629  ;;  %v1642_v51 = vmul.f32 %v4209_v13, %v4932_v23 }
 0x7d1   :  { %v1633_v2 = vpop.xlane.xlu1 %1632  ;;  %4220 = vrcp.f32 %v1630_v19  ;;  %3875 = vmatmul.mubr.msk.bf16.gmra.mrb[44].mxu1 %vm602_vm3, %v1328_v15  ;;  %v1643_v34 = vmul.f32 %v4211_v42, %v4929_v58 }
 0x7d2   :  { %4222 = vrcp.f32 %v1633_v2  ;;  %3893 = vmatpush3.bf16.xpose.msra.mxu1 %v1670_v62 }
 0x7d3   :  { %v4213_v25 = vpop.eup %4212  ;;  %v1650_v14 = vpack.c.bf16 %v1643_v34, %v1642_v51  ;;  %3952 = vmatprep.subr.bf16.mxu1 %v5000_v21 }
 0x7d4   :  { %v4215_v54 = vpop.eup %4214  ;;  %v1644_v49 = vmul.f32 %v4213_v25, %v4940_v55 }
 0x7d5   :  { %v1645_v53 = vmul.f32 %v4215_v54, %v4938_v63  ;;  %3894 = vmatprep.mubr.msk.bf16.mxu1 %vm602_vm3, %v1650_v14 }
 0x7d7   :  { %v4217_v23 = vpop.eup %4216  ;;  %v1651_v30 = vpack.c.bf16 %v1645_v53, %v1644_v49 }
 0x7d8   :  { %v4219_v18 = vpop.eup %4218  ;;  %v1646_v41 = vmul.f32 %v4217_v23, %v4948_v24  ;;  %v2056_v24 = vpop.trf.xlu0 }
 0x7d9   :  { %3895 = vmatmul.mubr.msk.bf16.vlgmr.msra.gmra.mrb[48].mxu1 %vm602_vm3, %v1651_v30  ;;  %v1647_v58 = vmul.f32 %v4219_v18, %v4946_v56 }
 0x7da   :  { %3953 = vmatpush3.bf16.msra.mxu1 %v5000_v21 }
 0x7db   :  { %v4221_v11 = vpop.eup %4220  ;;  %3954 = vmatprep.subr.bf16.mxu1 %v4998_v47  ;;  %v1652_v16 = vpack.c.bf16 %v1647_v58, %v1646_v41 }
 0x7dc   :  { %v4223_v55 = vpop.eup %4222  ;;  %v1648_v63 = vmul.f32 %v4221_v11, %v4958_v39  ;;  %v2057_v56 = vpop.trf.xlu0 }
 0x7dd   :  { %3898 = vmatprep.mubr.msk.bf16.mxu1 %vm602_vm3, %v1652_v16  ;;  %v1649_v43 = vmul.f32 %v4223_v55, %v4954_v20 }
 0x7de   :  { %3955 = vmatpush3.bf16.msra.mxu1 %v4998_v47 }
 0x7df   :  { %v1653_v26 = vpack.c.bf16 %v1649_v43, %v1648_v63  ;;  %v3926_v43 = vpop.f32.mrb[76].mxu0 }
 0x7e0   :  { %v2058_v21 = vpop.trf.xlu0 }
 0x7e1   :  { %3899 = vmatmul.mubr.msk.bf16.gmra.mrb[52].mxu1 %vm602_vm3, %v1653_v26 }
 0x7e2   :  { %3956 = vmatprep.mubr.msk.bf16.mxu1 %vm524_vm2, %v2056_v24  ;;  %v1913_v24 = vpop.f32.mrb[77].mxu0 }
 0x7e3   :  { %v3927_v26 = vpop.f32.mrb[78].mxu0 }
 0x7e4   :  { %v2059_v44 = vpop.trf.xlu0 }
 0x7e9   :  { %3957 = vmatmul.mubr.msk.bf16.vlgmr.msra.gmra.mrb[56].mxu1 %vm524_vm2, %v2057_v56  ;;  %v5107_v56 = vpack.c.bf16 %v3927_v26, %v3926_v43 }
 0x7ea   :  { %3960 = vmatprep.mubr.msk.bf16.mxu1 %vm524_vm2, %v2058_v21  ;;  %v1916_v21 = vpop.f32.mrb[79].mxu0 }
 0x7f1   :  { %3961 = vmatmul.mubr.msk.bf16.gmra.mrb[60].mxu1 %vm524_vm2, %v2059_v44  ;;  %v5109_v44 = vpack.c.bf16 %v1916_v21, %v1913_v24 }
 0x89b   :  { %v5046_v39 = vpop.f32.mrb[40].mxu1 }
 0x89c   :  { %v5048_v20 = vpop.f32.mrb[41].mxu1 }
 0x89d   :  { %v5050_v47 = vpop.f32.mrb[42].mxu1 }
 0x89e   :  { %v5052_v40 = vpop.f32.mrb[43].mxu1 }
 0x8a4   :  { %v5054_v37 = vpop.f32.mrb[44].mxu1 }
 0x8a5   :  { %v5056_v27 = vpop.f32.mrb[45].mxu1 }
 0x8a6   :  { %v5058_v60 = vpop.f32.mrb[46].mxu1 }
 0x8a7   :  { %v5060_v45 = vpop.f32.mrb[47].mxu1 }
 0x8ac   :  { %v5062_v33 = vpop.f32.mrb[48].mxu1 }
 0x8ad   :  { %v5064_v22 = vpop.f32.mrb[49].mxu1 }
 0x8ae   :  { %v5066_v13 = vpop.f32.mrb[50].mxu1 }
 0x8af   :  { %v5068_v15 = vpop.f32.mrb[51].mxu1 }
 0x8b4   :  { %v5070_v42 = vpop.f32.mrb[52].mxu1 }
 0x8b5   :  { %v5072_v19 = vpop.f32.mrb[53].mxu1 }
 0x8b6   :  { %v5074_v2 = vpop.f32.mrb[54].mxu1 }
 0x8b7   :  { %v5076_v51 = vpop.f32.mrb[55].mxu1 }
 0x8bc   :  { %v3958_v62 = vpop.f32.mrb[56].mxu1 }
 0x8bd   :  { %v5078_v34 = vpop.f32.mrb[57].mxu1  ;;  %v2147_v25 = vsel %vm602_vm3, %v3958_v62, -inf }
 0x8be   :  { %2148 = vmax.xlane.f32.xlu1 %v2147_v25  ;;  %v5081_v14 = vpop.f32.mrb[58].mxu1  ;;  %v2141_v49 = vsel %vm602_vm3, %v5078_v34, -inf  ;;  %v3930_v25 = vpop.f32.mrb[80].mxu0 }
 0x8bf   :  { %v5083_v54 = vpop.f32.mrb[59].mxu1  ;;  %v2150_v23 = vsel %vm602_vm3, %v5081_v14, -inf }
 0x8c0   :  { %v2144_v58 = vsel %vm602_vm3, %v5083_v54, -inf }
 0x8c2   :  { %2142 = vmax.xlane.f32.xlu1 %v2141_v49  ;;  %v1929_v49 = vpop.f32.mrb[81].mxu0 }
 0x8c4   :  { %v5087_v53 = vpop.f32.mrb[60].mxu1 }
 0x8c5   :  { %v5091_v30 = vpop.f32.mrb[61].mxu1  ;;  %v2159_v11 = vsel %vm602_vm3, %v5087_v53, -inf }
 0x8c6   :  { %2151 = vmax.xlane.f32.xlu1 %v2150_v23  ;;  %v5093_v18 = vpop.f32.mrb[62].mxu1  ;;  %v2153_v16 = vsel %vm602_vm3, %v5091_v30, -inf  ;;  %v3931_v23 = vpop.f32.mrb[82].mxu0 }
 0x8c7   :  { %v5095_v41 = vpop.f32.mrb[63].mxu1  ;;  %v2162_v63 = vsel %vm602_vm3, %v5093_v18, -inf }
 0x8c8   :  { %v2156_v55 = vsel %vm602_vm3, %v5095_v41, -inf }
 0x8ca   :  { %2145 = vmax.xlane.f32.xlu1 %v2144_v58  ;;  %v5111_v58 = vpack.c.bf16 %v3931_v23, %v3930_v25 }
 0x8ce   :  { %2160 = vmax.xlane.f32.xlu1 %v2159_v11  ;;  %v1932_v11 = vpop.f32.mrb[83].mxu0 }
 0x8d2   :  { %2154 = vmax.xlane.f32.xlu1 %v2153_v16  ;;  %v5113_v16 = vpack.c.bf16 %v1932_v11, %v1929_v49 }
 0x8d6   :  { %2157 = vmax.xlane.f32.xlu1 %v2156_v55  ;;  %v3934_v55 = vpop.f32.mrb[84].mxu0 }
 0x8d7   :  { %v1945_v59 = vpop.f32.mrb[85].mxu0 }
 0x8d8   :  { %v3935_v9 = vpop.f32.mrb[86].mxu0 }
 0x8d9   :  { %v1948_v35 = vpop.f32.mrb[87].mxu0 }
 0x8da   :  { %2163 = vmax.xlane.f32.xlu1 %v2162_v63  ;;  %v2039_v63 = vpack.c.bf16 %v3935_v9, %v3934_v55  ;;  %v2038_v32 = vpack.c.bf16 %v1948_v35, %v1945_v59  ;;  %v3938_v17 = vpop.f32.mrb[88].mxu0 }
 0x8db   :  { %v1961_v43 = vpop.f32.mrb[89].mxu0 }
 0x8dc   :  { %v3939_v26 = vpop.f32.mrb[90].mxu0  ;;  %4024 = vmatprep.subr.bf16.mxu0 %v2038_v32 }
 0x8dd   :  { %v2041_v24 = vpack.c.bf16 %v3939_v26, %v3938_v17  ;;  %v1964_v21 = vpop.f32.mrb[91].mxu0  ;;  %4025 = vmatpush3.bf16.msra.mxu0 %v2038_v32 }
 0x8de   :  { %v2040_v0 = vpack.c.bf16 %v1964_v21, %v1961_v43  ;;  %4026 = vmatprep.subr.bf16.mxu0 %v2039_v63 }
 0x8df   :  { %v2249_v9 = vsel %vm602_vm3, %v2041_v24, 0 }
 0x8e0   :  { %v2246_v25 = vsel %vm602_vm3, %v2040_v0, 0  ;;  %4058 = vmatprep.subr.msk.bf16.mxu1 %vm602_vm3, %v2040_v0 }
 0x8e1   :  { %3965 = vmatpush3.bf16.xpose.msra.mxu1 %v2246_v25  ;;  %4027 = vmatpush3.bf16.msra.mxu0 %v2039_v63 }
 0x8e2   :  { %4059 = vmatprep.subr.msk.bf16.mxu1 %vm602_vm3, %v2041_v24 }
 0x8e9   :  { %3967 = vmatpush3.bf16.xpose.msra.mxu1 %v2249_v9 }
 0x8ea   :  { %3976 = vmatprep.subr.bf16.mxu1 %v5109_v44 }
 0x94b   :  { %v2149_v59 = vpop.xlane.xlu1 %2148 }
 0x94c   :  { %v2167_v35 = vsub.f32 %v3958_v62, %v2149_v59 }
 0x94e   :  { %v2177_v17 = vmul.f32 1.442695, %v2167_v35 }
 0x94f   :  { %v2143_v49 = vpop.xlane.xlu1 %2142 }
 0x950   :  { %4224 = vpow2.f32 %v2177_v17  ;;  %v2165_v32 = vsub.f32 %v5078_v34, %v2143_v49 }
 0x952   :  { %v2173_v23 = vmul.f32 1.442695, %v2165_v32 }
 0x953   :  { %v2152_v11 = vpop.xlane.xlu1 %2151 }
 0x954   :  { %4226 = vpow2.f32 %v2173_v23  ;;  %v2168_v0 = vsub.f32 %v5081_v14, %v2152_v11 }
 0x956   :  { %v2179_v55 = vmul.f32 1.442695, %v2168_v0 }
 0x957   :  { %v2146_v63 = vpop.xlane.xlu1 %2145 }
 0x958   :  { %4228 = vpow2.f32 %v2179_v55  ;;  %v2166_v43 = vsub.f32 %v5083_v54, %v2146_v63 }
 0x95a   :  { %v5123_v26 = vpop.eup %4224  ;;  %v2175_v24 = vmul.f32 1.442695, %v2166_v43 }
 0x95b   :  { %v2161_v21 = vpop.xlane.xlu1 %2160  ;;  %v2195_v62 = vsel %vm602_vm3, %v5123_v26, 0.0 }
 0x95c   :  { %4230 = vpow2.f32 %v2175_v24  ;;  %v2171_v34 = vsub.f32 %v5087_v53, %v2161_v21  ;;  %2196 = vadd.xlane.f32.xlu1 %v2195_v62 }
 0x95e   :  { %v4227_v25 = vpop.eup %4226  ;;  %v2185_v9 = vmul.f32 1.442695, %v2171_v34 }
 0x95f   :  { %v2155_v59 = vpop.xlane.xlu1 %2154  ;;  %v2189_v14 = vsel %vm602_vm3, %v4227_v25, 0.0 }
 0x960   :  { %4232 = vpow2.f32 %v2185_v9  ;;  %v2169_v35 = vsub.f32 %v5091_v30, %v2155_v59  ;;  %2190 = vadd.xlane.f32.xlu1 %v2189_v14 }
 0x962   :  { %v4229_v54 = vpop.eup %4228  ;;  %v2181_v17 = vmul.f32 1.442695, %v2169_v35 }
 0x963   :  { %v2158_v49 = vpop.xlane.xlu1 %2157  ;;  %v2198_v32 = vsel %vm602_vm3, %v4229_v54, 0.0 }
 0x964   :  { %4234 = vpow2.f32 %v2181_v17  ;;  %v2170_v23 = vsub.f32 %v5095_v41, %v2158_v49  ;;  %2199 = vadd.xlane.f32.xlu1 %v2198_v32 }
 0x966   :  { %v4231_v53 = vpop.eup %4230  ;;  %v2183_v11 = vmul.f32 1.442695, %v2170_v23  ;;  %v5569_v23 = vpack.c.bf16 %v4970_v10, %v4960_v28 }
 0x967   :  { %v2164_v0 = vpop.xlane.xlu1 %2163  ;;  %v2192_v55 = vsel %vm602_vm3, %v4231_v53, 0.0 }
 0x968   :  { %4236 = vpow2.f32 %v2183_v11  ;;  %v2172_v63 = vsub.f32 %v5093_v18, %v2164_v0  ;;  %2193 = vadd.xlane.f32.xlu1 %v2192_v55  ;;  %v3942_v18 = vpop.f32.mrb[92].mxu0  ;;  %v5570_v11 = vpack.c.bf16 %v4966_v36, %v4956_v29 }
 0x969   :  { %v1977_v14 = vpop.f32.mrb[93].mxu0 }
 0x96a   :  { %v4233_v30 = vpop.eup %4232  ;;  %v2187_v43 = vmul.f32 1.442695, %v2172_v63  ;;  %v3943_v35 = vpop.f32.mrb[94].mxu0 }
 0x96b   :  { %v2207_v24 = vsel %vm602_vm3, %v4233_v30, 0.0  ;;  %v2043_v17 = vpack.c.bf16 %v3943_v35, %v3942_v18  ;;  %v1980_v49 = vpop.f32.mrb[95].mxu0 }
 0x96c   :  { %4238 = vpow2.f32 %v2187_v43  ;;  %2208 = vadd.xlane.f32.xlu1 %v2207_v24  ;;  %v2042_v32 = vpack.c.bf16 %v1980_v49, %v1977_v14 }
 0x96e   :  { %v4235_v21 = vpop.eup %4234 }
 0x96f   :  { %v2201_v62 = vsel %vm602_vm3, %v4235_v21, 0.0 }
 0x970   :  { %2202 = vadd.xlane.f32.xlu0 %v2201_v62 }
 0x972   :  { %v4237_v41 = vpop.eup %4236 }
 0x973   :  { %v2204_v34 = vsel %vm602_vm3, %v4237_v41, 0.0 }
 0x974   :  { %2205 = vadd.xlane.f32.xlu1 %v2204_v34 }
 0x976   :  { %v4239_v9 = vpop.eup %4238 }
 0x977   :  { %v2210_v59 = vsel %vm602_vm3, %v4239_v9, 0.0 }
 0x978   :  { %2211 = vadd.xlane.f32.xlu1 %v2210_v59 }
 0x9a5   :  { %2357 = vxpose.xlu1.c.b16.start [1/2] (short) (narrow) %v5569_v23, 64 }
 0x9a9   :  { %2358 = vxpose.xlu1.c.b16.end [2/2] (short) (narrow) %v5570_v11, 64 }
 0x9e9   :  { %v2197_v0 = vpop.xlane.xlu1 %2196 }
 0x9ed   :  { %v2191_v55 = vpop.xlane.xlu1 %2190 }
 0x9f1   :  { %v2200_v63 = vpop.xlane.xlu1 %2199 }
 0x9f2   :  { %4240 = vrcp.f32 %v2200_v63 }
 0x9f3   :  { %4242 = vrcp.f32 %v2191_v55 }
 0x9f4   :  { %4244 = vrcp.f32 %v2197_v0 }
 0x9f5   :  { %v2194_v43 = vpop.xlane.xlu1 %2193 }
 0x9f6   :  { %4246 = vrcp.f32 %v2194_v43 }
 0x9f9   :  { %v2209_v62 = vpop.xlane.xlu1 %2208 }
 0x9fc   :  { %v4241_v24 = vpop.eup %4240 }
 0x9fd   :  { %v2203_v34 = vpop.xlane.xlu0 %2202  ;;  %v4243_v59 = vpop.eup %4242  ;;  %v2224_v28 = vmul.f32 %v4241_v24, %v4229_v54 }
 0x9fe   :  { %v4245_v18 = vpop.eup %4244  ;;  %4248 = vrcp.f32 %v2203_v34  ;;  %v2221_v35 = vmul.f32 %v4243_v59, %v4227_v25 }
 0x9ff   :  { %v2223_v36 = vmul.f32 %v4245_v18, %v5123_v26 }
 0xa00   :  { %v4247_v14 = vpop.eup %4246 }
 0xa01   :  { %v2206_v10 = vpop.xlane.xlu1 %2205  ;;  %v2222_v29 = vmul.f32 %v4247_v14, %v4231_v53  ;;  %v2230_v23 = vpack.c.bf16 %v2224_v28, %v2223_v36 }
 0xa02   :  { %4250 = vrcp.f32 %v2206_v10 }
 0xa03   :  { %v2229_v49 = vpack.c.bf16 %v2222_v29, %v2221_v35  ;;  %4252 = vrcp.f32 %v2209_v62 }
 0xa05   :  { %3968 = vmatprep.mubr.msk.bf16.mxu1 %vm602_vm3, %v2229_v49  ;;  %v2212_v11 = vpop.xlane.xlu1 %2211 }
 0xa06   :  { %4254 = vrcp.f32 %v2212_v11  ;;  %3969 = vmatmul.mubr.msk.bf16.vlgmr.msra.gmra.mrb[64].mxu1 %vm602_vm3, %v2230_v23 }
 0xa07   :  { %3977 = vmatpush3.bf16.msra.mxu1 %v5109_v44 }
 0xa08   :  { %3978 = vmatprep.subr.bf16.mxu1 %v5107_v56  ;;  %v4249_v54 = vpop.eup %4248 }
 0xa09   :  { %v2225_v26 = vmul.f32 %v4249_v54, %v4235_v21 }
 0xa0b   :  { %3979 = vmatpush3.bf16.msra.mxu1 %v5107_v56  ;;  %v2365_v62 = vpop.trf.xlu1  ;;  %v2555_v56 = vsel %vm602_vm3, %v2042_v32, 0 }
 0xa0c   :  { %v4251_v25 = vpop.eup %4250  ;;  %4060 = vmatprep.subr.msk.bf16.mxu1 %vm602_vm3, %v2042_v32 }
 0xa0d   :  { %v2226_v53 = vmul.f32 %v4251_v25, %v4237_v41  ;;  %v4253_v0 = vpop.eup %4252 }
 0xa0e   :  { %v2227_v43 = vmul.f32 %v4253_v0, %v4233_v30  ;;  %v2558_v30 = vsel %vm602_vm3, %v2043_v17, 0 }
 0xa0f   :  { %v2231_v55 = vpack.c.bf16 %v2226_v53, %v2225_v26  ;;  %v2366_v44 = vpop.trf.xlu1 }
 0xa10   :  { %v4255_v63 = vpop.eup %4254 }
 0xa11   :  { %3972 = vmatprep.mubr.msk.bf16.mxu1 %vm602_vm3, %v2231_v55  ;;  %v2228_v24 = vmul.f32 %v4255_v63, %v4239_v9 }
 0xa13   :  { %v2232_v34 = vpack.c.bf16 %v2228_v24, %v2227_v43  ;;  %v2367_v59 = vpop.trf.xlu1 }
 0xa15   :  { %3973 = vmatmul.mubr.msk.bf16.gmra.mrb[68].mxu1 %vm602_vm3, %v2232_v34 }
 0xa16   :  { %3980 = vmatprep.mubr.msk.bf16.mxu1 %vm524_vm2, %v2365_v62 }
 0xa17   :  { %v2368_v21 = vpop.trf.xlu1 }
 0xa1d   :  { %3981 = vmatmul.mubr.msk.bf16.vlgmr.msra.gmra.mrb[72].mxu1 %vm524_vm2, %v2366_v44 }
 0xa1e   :  { %3989 = vmatpush3.bf16.xpose.msra.mxu1 %v2555_v56  ;;  %3984 = vmatprep.mubr.msk.bf16.mxu1 %vm524_vm2, %v2367_v59 }
 0xa1f   :  { %4061 = vmatprep.subr.msk.bf16.mxu1 %vm602_vm3, %v2043_v17 }
 0xa25   :  { %3985 = vmatmul.mubr.msk.bf16.gmra.mrb[76].mxu1 %vm524_vm2, %v2368_v21 }
 0xa26   :  { %3991 = vmatpush3.bf16.xpose.msra.mxu1 %v2558_v30 }
 0xa27   :  { %4000 = vmatprep.subr.bf16.mxu1 %v5113_v16 }
 0xad9   :  { %v3970_v41 = vpop.f32.mrb[64].mxu1 }
 0xada   :  { %v3580_v9 = vpack.c.bf16 %v3970_v41, %v3970_v41  ;;  %v2285_v18 = vpop.f32.mrb[65].mxu1 }
 0xadb   :  { %v3578_v32 = vpack.c.bf16 %v2285_v18, %v2285_v18  ;;  %v3971_v14 = vpop.f32.mrb[66].mxu1 }
 0xadc   :  { %2351 = vst.msk [vmem:[#allocation2 + $0x28] sm:$0xf] %vm810_vm4, %v3580_v9  ;;  %v3581_v28 = vpack.c.bf16 %v3971_v14, %v3971_v14  ;;  %v2288_v10 = vpop.f32.mrb[67].mxu1 }
 0xadd   :  { %2349 = vst.msk [vmem:[#allocation2 + $0x20] sm:$0xf] %vm810_vm4, %v3578_v32  ;;  %v3579_v35 = vpack.c.bf16 %v2288_v10, %v2288_v10 }
 0xade   :  { %2352 = vst.msk [vmem:[#allocation2 + $0x2c] sm:$0xf] %vm810_vm4, %v3581_v28 }
 0xadf   :  { %2350 = vst.msk [vmem:[#allocation2 + $0x24] sm:$0xf] %vm810_vm4, %v3579_v35 }
 0xae8   :  { %v3974_v17 = vpop.f32.mrb[68].mxu1 }
 0xae9   :  { %v3584_v29 = vpack.c.bf16 %v3974_v17, %v3974_v17  ;;  %v2301_v36 = vpop.f32.mrb[69].mxu1 }
 0xaea   :  { %v3582_v49 = vpack.c.bf16 %v2301_v36, %v2301_v36  ;;  %v3975_v23 = vpop.f32.mrb[70].mxu1 }
 0xaeb   :  { %2355 = vst.msk [vmem:[#allocation2 + $0x38] sm:$0xf] %vm810_vm4, %v3584_v29  ;;  %v3585_v11 = vpack.c.bf16 %v3975_v23, %v3975_v23  ;;  %v2304_v54 = vpop.f32.mrb[71].mxu1 }
 0xaec   :  { %2353 = vst.msk [vmem:[#allocation2 + $0x30] sm:$0xf] %vm810_vm4, %v3582_v49  ;;  %v3583_v25 = vpack.c.bf16 %v2304_v54, %v2304_v54 }
 0xaed   :  { %2356 = vst.msk [vmem:[#allocation2 + $0x3c] sm:$0xf] %vm810_vm4, %v3585_v11 }
 0xaee   :  { %2354 = vst.msk [vmem:[#allocation2 + $0x34] sm:$0xf] %vm810_vm4, %v3583_v25 }
 0xaf0   :  { %v3982_v26 = vpop.f32.mrb[72].mxu1 }
 0xaf1   :  { %v2419_v53 = vpop.f32.mrb[73].mxu1  ;;  %v2456_v0 = vsel %vm602_vm3, %v3982_v26, -inf }
 0xaf2   :  { %2457 = vmax.xlane.f32.xlu0 %v2456_v0  ;;  %v3983_v55 = vpop.f32.mrb[74].mxu1  ;;  %v2450_v43 = vsel %vm602_vm3, %v2419_v53, -inf }
 0xaf3   :  { %v2422_v63 = vpop.f32.mrb[75].mxu1  ;;  %v2459_v62 = vsel %vm602_vm3, %v3983_v55, -inf }
 0xaf4   :  { %v2453_v59 = vsel %vm602_vm3, %v2422_v63, -inf }
 0xaf6   :  { %2451 = vmax.xlane.f32.xlu0 %v2450_v43 }
 0xaf8   :  { %v3986_v24 = vpop.f32.mrb[76].mxu1 }
 0xaf9   :  { %v2435_v34 = vpop.f32.mrb[77].mxu1  ;;  %v2468_v21 = vsel %vm602_vm3, %v3986_v24, -inf }
 0xafa   :  { %2460 = vmax.xlane.f32.xlu0 %v2459_v62  ;;  %v3987_v44 = vpop.f32.mrb[78].mxu1  ;;  %v2462_v30 = vsel %vm602_vm3, %v2435_v34, -inf }
 0xafb   :  { %v2438_v56 = vpop.f32.mrb[79].mxu1  ;;  %v2471_v9 = vsel %vm602_vm3, %v3987_v44, -inf }
 0xafc   :  { %v2465_v41 = vsel %vm602_vm3, %v2438_v56, -inf }
 0xafe   :  { %2454 = vmax.xlane.f32.xlu0 %v2453_v59 }
 0xb02   :  { %2469 = vmax.xlane.f32.xlu0 %v2468_v21 }
 0xb06   :  { %2463 = vmax.xlane.f32.xlu0 %v2462_v30 }
 0xb0a   :  { %2466 = vmax.xlane.f32.xlu0 %v2465_v41 }
 0xb0e   :  { %2472 = vmax.xlane.f32.xlu0 %v2471_v9 }
 0xb7f   :  { %v2458_v18 = vpop.xlane.xlu0 %2457 }
 0xb80   :  { %v2476_v32 = vsub.f32 %v3982_v26, %v2458_v18 }
 0xb82   :  { %v2486_v14 = vmul.f32 1.442695, %v2476_v32 }
 0xb83   :  { %v2452_v28 = vpop.xlane.xlu0 %2451 }
 0xb84   :  { %4256 = vpow2.f32 %v2486_v14  ;;  %v2474_v10 = vsub.f32 %v2419_v53, %v2452_v28 }
 0xb86   :  { %v2482_v35 = vmul.f32 1.442695, %v2474_v10 }
 0xb87   :  { %v2461_v17 = vpop.xlane.xlu0 %2460 }
 0xb88   :  { %4258 = vpow2.f32 %v2482_v35  ;;  %v2477_v29 = vsub.f32 %v3983_v55, %v2461_v17 }
 0xb8a   :  { %v2488_v36 = vmul.f32 1.442695, %v2477_v29 }
 0xb8b   :  { %v2455_v49 = vpop.xlane.xlu0 %2454 }
 0xb8c   :  { %4260 = vpow2.f32 %v2488_v36  ;;  %v2475_v23 = vsub.f32 %v2422_v63, %v2455_v49 }
 0xb8e   :  { %v5177_v11 = vpop.eup %4256  ;;  %v2484_v54 = vmul.f32 1.442695, %v2475_v23  ;;  %v5571_v23 = vpack.c.bf16 %v4992_v31, %v4988_v1 }
 0xb8f   :  { %v2470_v25 = vpop.xlane.xlu0 %2469  ;;  %v2504_v0 = vsel %vm602_vm3, %v5177_v11, 0.0 }
 0xb90   :  { %4262 = vpow2.f32 %v2484_v54  ;;  %v2480_v26 = vsub.f32 %v3986_v24, %v2470_v25  ;;  %2505 = vadd.xlane.f32.xlu0 %v2504_v0  ;;  %v5572_v54 = vpack.c.bf16 %v4990_v7, %v4986_v57  ;;  %v5573_v25 = vpack.c.bf16 %v4982_v61, %v4976_v8 }
 0xb91   :  { %v5574_v0 = vpack.c.bf16 %v4978_v12, %v4974_v38 }
 0xb92   :  { %v4259_v43 = vpop.eup %4258  ;;  %v2494_v53 = vmul.f32 1.442695, %v2480_v26 }
 0xb93   :  { %v2464_v62 = vpop.xlane.xlu0 %2463  ;;  %v2498_v59 = vsel %vm602_vm3, %v4259_v43, 0.0 }
 0xb94   :  { %4264 = vpow2.f32 %v2494_v53  ;;  %v2478_v55 = vsub.f32 %v2435_v34, %v2464_v62  ;;  %2499 = vadd.xlane.f32.xlu0 %v2498_v59 }
 0xb96   :  { %v4261_v21 = vpop.eup %4260  ;;  %v2490_v63 = vmul.f32 1.442695, %v2478_v55 }
 0xb97   :  { %v2467_v30 = vpop.xlane.xlu0 %2466  ;;  %v2507_v41 = vsel %vm602_vm3, %v4261_v21, 0.0 }
 0xb98   :  { %4266 = vpow2.f32 %v2490_v63  ;;  %v2479_v9 = vsub.f32 %v2438_v56, %v2467_v30  ;;  %2508 = vadd.xlane.f32.xlu1 %v2507_v41 }
 0xb9a   :  { %v4263_v18 = vpop.eup %4262  ;;  %v2492_v32 = vmul.f32 1.442695, %v2479_v9 }
 0xb9b   :  { %v2473_v24 = vpop.xlane.xlu0 %2472  ;;  %v2501_v14 = vsel %vm602_vm3, %v4263_v18, 0.0 }
 0xb9c   :  { %4268 = vpow2.f32 %v2492_v32  ;;  %v2481_v28 = vsub.f32 %v3987_v44, %v2473_v24  ;;  %2502 = vadd.xlane.f32.xlu0 %v2501_v14 }
 0xb9e   :  { %v5184_v10 = vpop.eup %4264  ;;  %v2496_v34 = vmul.f32 1.442695, %v2481_v28 }
 0xb9f   :  { %v2516_v35 = vsel %vm602_vm3, %v5184_v10, 0.0 }
 0xba0   :  { %4270 = vpow2.f32 %v2496_v34  ;;  %2517 = vadd.xlane.f32.xlu0 %v2516_v35 }
 0xba2   :  { %v4267_v17 = vpop.eup %4266 }
 0xba3   :  { %v2510_v56 = vsel %vm602_vm3, %v4267_v17, 0.0 }
 0xba4   :  { %2511 = vadd.xlane.f32.xlu0 %v2510_v56 }
 0xba6   :  { %v4269_v29 = vpop.eup %4268 }
 0xba7   :  { %v2513_v36 = vsel %vm602_vm3, %v4269_v29, 0.0 }
 0xba8   :  { %2514 = vadd.xlane.f32.xlu0 %v2513_v36 }
 0xbaa   :  { %v4271_v49 = vpop.eup %4270 }
 0xbab   :  { %v2519_v44 = vsel %vm602_vm3, %v4271_v49, 0.0 }
 0xbac   :  { %2520 = vadd.xlane.f32.xlu0 %v2519_v44 }
 0xbc5   :  { %3005 = vxpose.xlu1.c.b16.start [1/2] (short) (narrow) %v5571_v23, 64 }
 0xbc9   :  { %3006 = vxpose.xlu1.c.b16.end [2/2] (short) (narrow) %v5572_v54, 64 }
 0xbd9   :  { %2681 = vxpose.xlu0.c.b16.start [1/2] (short) (narrow) %v5573_v25, 64 }
 0xbdd   :  { %2682 = vxpose.xlu0.c.b16.end [2/2] (short) (narrow) %v5574_v0, 64 }
 0xc1d   :  { %v2506_v26 = vpop.xlane.xlu0 %2505 }
 0xc21   :  { %v2500_v53 = vpop.xlane.xlu0 %2499 }
 0xc25   :  { %v2509_v62 = vpop.xlane.xlu1 %2508 }
 0xc26   :  { %4272 = vrcp.f32 %v2509_v62 }
 0xc27   :  { %4274 = vrcp.f32 %v2500_v53 }
 0xc28   :  { %4276 = vrcp.f32 %v2506_v26 }
 0xc29   :  { %v2503_v1 = vpop.xlane.xlu0 %2502 }
 0xc2a   :  { %4278 = vrcp.f32 %v2503_v1 }
 0xc2b   :  { %v3013_v31 = vpop.trf.xlu1 }
 0xc2c   :  { %4028 = vmatprep.mubr.msk.bf16.mxu0 %vm524_vm2, %v3013_v31 }
 0xc2d   :  { %v2518_v57 = vpop.xlane.xlu0 %2517 }
 0xc2f   :  { %v3014_v7 = vpop.trf.xlu1 }
 0xc30   :  { %4029 = vmatmul.mubr.msk.bf16.vlgmr.msra.gmra.mrb[104].mxu0 %vm524_vm2, %v3014_v7  ;;  %v4273_v8 = vpop.eup %4272 }
 0xc31   :  { %v2512_v61 = vpop.xlane.xlu0 %2511  ;;  %v4275_v59 = vpop.eup %4274  ;;  %v2533_v63 = vmul.f32 %v4273_v8, %v4261_v21 }
 0xc32   :  { %v4277_v38 = vpop.eup %4276  ;;  %4280 = vrcp.f32 %v2512_v61  ;;  %v2530_v41 = vmul.f32 %v4275_v59, %v4259_v43 }
 0xc33   :  { %v3015_v12 = vpop.trf.xlu1  ;;  %v2532_v32 = vmul.f32 %v4277_v38, %v5177_v11 }
 0xc34   :  { %v4279_v55 = vpop.eup %4278  ;;  %4032 = vmatprep.mubr.msk.bf16.mxu0 %vm524_vm2, %v3015_v12 }
 0xc35   :  { %v2515_v30 = vpop.xlane.xlu0 %2514  ;;  %v2531_v9 = vmul.f32 %v4279_v55, %v4263_v18  ;;  %v2539_v28 = vpack.c.bf16 %v2533_v63, %v2532_v32 }
 0xc36   :  { %4282 = vrcp.f32 %v2515_v30 }
 0xc37   :  { %v2538_v24 = vpack.c.bf16 %v2531_v9, %v2530_v41  ;;  %v3016_v14 = vpop.trf.xlu1  ;;  %4284 = vrcp.f32 %v2518_v57 }
 0xc38   :  { %4033 = vmatmul.mubr.msk.bf16.gmra.mrb[108].mxu0 %vm524_vm2, %v3016_v14 }
 0xc39   :  { %3992 = vmatprep.mubr.msk.bf16.mxu1 %vm602_vm3, %v2538_v24  ;;  %v2521_v34 = vpop.xlane.xlu0 %2520 }
 0xc3a   :  { %4286 = vrcp.f32 %v2521_v34  ;;  %3993 = vmatmul.mubr.msk.bf16.vlgmr.msra.gmra.mrb[80].mxu1 %vm602_vm3, %v2539_v28 }
 0xc3b   :  { %4001 = vmatpush3.bf16.msra.mxu1 %v5113_v16 }
 0xc3c   :  { %4002 = vmatprep.subr.bf16.mxu1 %v5111_v58  ;;  %v4281_v43 = vpop.eup %4280 }
 0xc3d   :  { %v2534_v21 = vmul.f32 %v4281_v43, %v4267_v17  ;;  %v3946_v17 = vpop.f32.mrb[96].mxu0 }
 0xc3f   :  { %4003 = vmatpush3.bf16.msra.mxu1 %v5111_v58  ;;  %v2689_v36 = vpop.trf.xlu0 }
 0xc40   :  { %v4283_v11 = vpop.eup %4282 }
 0xc41   :  { %v2535_v18 = vmul.f32 %v4283_v11, %v4269_v29  ;;  %v4285_v35 = vpop.eup %4284  ;;  %v1993_v29 = vpop.f32.mrb[97].mxu0 }
 0xc42   :  { %v2536_v23 = vmul.f32 %v4285_v35, %v5184_v10  ;;  %v3947_v26 = vpop.f32.mrb[98].mxu0 }
 0xc43   :  { %v2540_v56 = vpack.c.bf16 %v2535_v18, %v2534_v21  ;;  %v2690_v16 = vpop.trf.xlu0  ;;  %v2045_v53 = vpack.c.bf16 %v3947_v26, %v3946_v17  ;;  %v1996_v10 = vpop.f32.mrb[99].mxu0 }
 0xc44   :  { %v4287_v44 = vpop.eup %4286  ;;  %v3950_v31 = vpop.f32.mrb[100].mxu0 }
 0xc45   :  { %3996 = vmatprep.mubr.msk.bf16.mxu1 %vm602_vm3, %v2540_v56  ;;  %v2537_v54 = vmul.f32 %v4287_v44, %v4271_v49  ;;  %v2044_v49 = vpack.c.bf16 %v1996_v10, %v1993_v29  ;;  %v2882_v1 = vsel %vm602_vm3, %v2045_v53, 0  ;;  %v2009_v57 = vpop.f32.mrb[101].mxu0 }
 0xc46   :  { %v3951_v7 = vpop.f32.mrb[102].mxu0 }
 0xc47   :  { %v2541_v25 = vpack.c.bf16 %v2537_v54, %v2536_v23  ;;  %v2691_v0 = vpop.trf.xlu0  ;;  %v2879_v62 = vsel %vm602_vm3, %v2044_v49, 0  ;;  %4062 = vmatprep.subr.msk.bf16.mxu1 %vm602_vm3, %v2044_v49  ;;  %v5224_v8 = vpack.c.bf16 %v3951_v7, %v3950_v31  ;;  %v2012_v61 = vpop.f32.mrb[103].mxu0 }
 0xc48   :  { %v5226_v59 = vpack.c.bf16 %v2012_v61, %v2009_v57 }
 0xc49   :  { %3997 = vmatmul.mubr.msk.bf16.gmra.mrb[84].mxu1 %vm602_vm3, %v2541_v25  ;;  %5575 = vst [vmem:[#allocation5_spill] sm:$0xff] %v5224_v8 }
 0xc4a   :  { %4004 = vmatprep.mubr.msk.bf16.mxu1 %vm524_vm2, %v2689_v36  ;;  %5576 = vst [vmem:[#allocation6_spill] sm:$0xff] %v5226_v59 }
 0xc4b   :  { %v2692_v58 = vpop.trf.xlu0 }
 0xc51   :  { %4005 = vmatmul.mubr.msk.bf16.vlgmr.msra.gmra.mrb[88].mxu1 %vm524_vm2, %v2690_v16 }
 0xc52   :  { %4008 = vmatprep.mubr.msk.bf16.mxu1 %vm524_vm2, %v2691_v0  ;;  %4013 = vmatpush3.bf16.xpose.msra.mxu1 %v2879_v62 }
 0xc53   :  { %4063 = vmatprep.subr.msk.bf16.mxu1 %vm602_vm3, %v2045_v53 }
 0xc59   :  { %4009 = vmatmul.mubr.msk.bf16.gmra.mrb[92].mxu1 %vm524_vm2, %v2692_v58 }
 0xc5a   :  { %4015 = vmatpush3.bf16.xpose.msra.mxu1 %v2882_v1 }
 0xc5b   :  { %4064 = vmatprep.subr.msk.bf16.mxu1 %vm602_vm3, %v5226_v59 }
 0xd03   :  { %v5230_v38 = vpop.f32.mrb[104].mxu0 }
 0xd04   :  { %v5232_v12 = vpop.f32.mrb[105].mxu0  ;;  %v3104_v31 = vsel %vm602_vm3, %v5230_v38, -inf }
 0xd05   :  { %v5234_v55 = vpop.f32.mrb[106].mxu0  ;;  %v3098_v62 = vsel %vm602_vm3, %v5232_v12, -inf }
 0xd06   :  { %v5236_v63 = vpop.f32.mrb[107].mxu0  ;;  %v3107_v57 = vsel %vm602_vm3, %v5234_v55, -inf }
 0xd07   :  { %v3101_v1 = vsel %vm602_vm3, %v5236_v63, -inf }
 0xd0b   :  { %v5238_v30 = vpop.f32.mrb[108].mxu0 }
 0xd0c   :  { %v5240_v41 = vpop.f32.mrb[109].mxu0 }
 0xd0d   :  { %v5242_v9 = vpop.f32.mrb[80].mxu1  ;;  %v5244_v32 = vpop.f32.mrb[110].mxu0  ;;  %v3110_v7 = vsel %vm602_vm3, %v5240_v41, -inf }
 0xd0e   :  { %v5246_v24 = vpop.f32.mrb[81].mxu1  ;;  %v5248_v14 = vpop.f32.mrb[111].mxu0 }
 0xd0f   :  { %v5250_v28 = vpop.f32.mrb[82].mxu1  ;;  %v3113_v61 = vsel %vm602_vm3, %v5248_v14, -inf }
 0xd10   :  { %v5252_v34 = vpop.f32.mrb[83].mxu1 }
 0xd1c   :  { %v5254_v43 = vpop.f32.mrb[84].mxu1 }
 0xd1d   :  { %v5256_v11 = vpop.f32.mrb[85].mxu1 }
 0xd1e   :  { %v5258_v21 = vpop.f32.mrb[86].mxu1 }
 0xd1f   :  { %5577 = vst [vmem:[#allocation7_spill] sm:$0xff] %v5258_v21  ;;  %v5260_v18 = vpop.f32.mrb[87].mxu1 }
 0xd24   :  { %v4006_v35 = vpop.f32.mrb[88].mxu1 }
 0xd25   :  { %v2743_v56 = vpop.f32.mrb[89].mxu1  ;;  %v2780_v25 = vsel %vm602_vm3, %v4006_v35, -inf }
 0xd26   :  { %v4007_v36 = vpop.f32.mrb[90].mxu1  ;;  %v2774_v44 = vsel %vm602_vm3, %v2743_v56, -inf }
 0xd27   :  { %2775 = vmax.xlane.f32.xlu0 %v2774_v44  ;;  %v2746_v23 = vpop.f32.mrb[91].mxu1  ;;  %v2783_v0 = vsel %vm602_vm3, %v4007_v36, -inf  ;;  %v3116_v44 = vsel %vm602_vm3, %v5238_v30, -inf }
 0xd28   :  { %v2777_v54 = vsel %vm602_vm3, %v2746_v23, -inf }
 0xd29   :  { %2778 = vmax.xlane.f32.xlu1 %v2777_v54  ;;  %v3119_v54 = vsel %vm602_vm3, %v5244_v32, -inf }
 0xd2b   :  { %2781 = vmax.xlane.f32.xlu0 %v2780_v25 }
 0xd2c   :  { %v4010_v16 = vpop.f32.mrb[92].mxu1 }
 0xd2d   :  { %2784 = vmax.xlane.f32.xlu1 %v2783_v0  ;;  %v2759_v58 = vpop.f32.mrb[93].mxu1  ;;  %v2792_v10 = vsel %vm602_vm3, %v4010_v16, -inf }
 0xd2e   :  { %v4011_v17 = vpop.f32.mrb[94].mxu1  ;;  %v2786_v29 = vsel %vm602_vm3, %v2759_v58, -inf }
 0xd2f   :  { %2787 = vmax.xlane.f32.xlu0 %v2786_v29  ;;  %v2762_v26 = vpop.f32.mrb[95].mxu1  ;;  %v2795_v49 = vsel %vm602_vm3, %v4011_v17, -inf }
 0xd30   :  { %v2789_v53 = vsel %vm602_vm3, %v2762_v26, -inf }
 0xd31   :  { %2790 = vmax.xlane.f32.xlu1 %v2789_v53 }
 0xd33   :  { %2793 = vmax.xlane.f32.xlu0 %v2792_v10 }
 0xd35   :  { %2796 = vmax.xlane.f32.xlu1 %v2795_v49 }
 0xd37   :  { %3099 = vmax.xlane.f32.xlu0 %v3098_v62 }
 0xd39   :  { %3102 = vmax.xlane.f32.xlu1 %v3101_v1 }
 0xd3b   :  { %3105 = vmax.xlane.f32.xlu0 %v3104_v31 }
 0xd3d   :  { %3108 = vmax.xlane.f32.xlu1 %v3107_v57 }
 0xd3f   :  { %3111 = vmax.xlane.f32.xlu0 %v3110_v7 }
 0xd41   :  { %3114 = vmax.xlane.f32.xlu1 %v3113_v61 }
 0xd43   :  { %3117 = vmax.xlane.f32.xlu0 %v3116_v44 }
 0xd45   :  { %3120 = vmax.xlane.f32.xlu1 %v3119_v54 }
 0xdb4   :  { %v2776_v25 = vpop.xlane.xlu0 %2775 }
 0xdb5   :  { %v2798_v0 = vsub.f32 %v2743_v56, %v2776_v25 }
 0xdb6   :  { %v2779_v29 = vpop.xlane.xlu1 %2778 }
 0xdb7   :  { %v2806_v53 = vmul.f32 1.442695, %v2798_v0  ;;  %v2799_v10 = vsub.f32 %v2746_v23, %v2779_v29 }
 0xdb8   :  { %v2782_v49 = vpop.xlane.xlu0 %2781 }
 0xdb9   :  { %4288 = vpow2.f32 %v2806_v53  ;;  %v2808_v62 = vmul.f32 1.442695, %v2799_v10  ;;  %v2800_v1 = vsub.f32 %v4006_v35, %v2782_v49 }
 0xdba   :  { %v2785_v31 = vpop.xlane.xlu1 %2784 }
 0xdbb   :  { %4290 = vpow2.f32 %v2808_v62  ;;  %v2810_v57 = vmul.f32 1.442695, %v2800_v1  ;;  %v2801_v7 = vsub.f32 %v4007_v36, %v2785_v31 }
 0xdbc   :  { %v2788_v61 = vpop.xlane.xlu0 %2787 }
 0xdbd   :  { %4292 = vpow2.f32 %v2810_v57  ;;  %v2812_v44 = vmul.f32 1.442695, %v2801_v7  ;;  %v2802_v8 = vsub.f32 %v2759_v58, %v2788_v61 }
 0xdbe   :  { %v2791_v59 = vpop.xlane.xlu1 %2790 }
 0xdbf   :  { %4294 = vpow2.f32 %v2812_v44  ;;  %v2814_v54 = vmul.f32 1.442695, %v2802_v8  ;;  %v2803_v21 = vsub.f32 %v2762_v26, %v2791_v59 }
 0xdc0   :  { %v2794_v56 = vpop.xlane.xlu0 %2793 }
 0xdc1   :  { %4296 = vpow2.f32 %v2814_v54  ;;  %v2816_v25 = vmul.f32 1.442695, %v2803_v21  ;;  %v2804_v23 = vsub.f32 %v4010_v16, %v2794_v56 }
 0xdc2   :  { %v2797_v0 = vpop.xlane.xlu1 %2796 }
 0xdc3   :  { %v5286_v29 = vpop.eup %4288  ;;  %4298 = vpow2.f32 %v2816_v25  ;;  %v2818_v35 = vmul.f32 1.442695, %v2804_v23  ;;  %v2805_v53 = vsub.f32 %v4011_v17, %v2797_v0 }
 0xdc4   :  { %v3100_v10 = vpop.xlane.xlu0 %3099  ;;  %v2822_v36 = vsel %vm602_vm3, %v5286_v29, 0.0 }
 0xdc5   :  { %v5290_v49 = vpop.eup %4290  ;;  %4300 = vpow2.f32 %v2818_v35  ;;  %v2820_v58 = vmul.f32 1.442695, %v2805_v53  ;;  %v3122_v8 = vsub.f32 %v5232_v12, %v3100_v10  ;;  %2823 = vadd.xlane.f32.xlu0 %v2822_v36 }
 0xdc6   :  { %v3103_v59 = vpop.xlane.xlu1 %3102  ;;  %v2825_v21 = vsel %vm602_vm3, %v5290_v49, 0.0 }
 0xdc7   :  { %v5295_v16 = vpop.eup %4292  ;;  %4302 = vpow2.f32 %v2820_v58  ;;  %v3130_v26 = vmul.f32 1.442695, %v3122_v8  ;;  %v3123_v17 = vsub.f32 %v5236_v63, %v3103_v59  ;;  %2826 = vadd.xlane.f32.xlu1 %v2825_v21 }
 0xdc8   :  { %v3106_v62 = vpop.xlane.xlu0 %3105  ;;  %v2828_v1 = vsel %vm602_vm3, %v5295_v16, 0.0 }
 0xdc9   :  { %v5300_v31 = vpop.eup %4294  ;;  %4304 = vpow2.f32 %v3130_v26  ;;  %v3132_v12 = vmul.f32 1.442695, %v3123_v17  ;;  %v3124_v57 = vsub.f32 %v5230_v38, %v3106_v62  ;;  %2829 = vadd.xlane.f32.xlu0 %v2828_v1 }
 0xdca   :  { %v3109_v7 = vpop.xlane.xlu1 %3108  ;;  %v2831_v61 = vsel %vm602_vm3, %v5300_v31, 0.0 }
 0xdcb   :  { %v5305_v44 = vpop.eup %4296  ;;  %4306 = vpow2.f32 %v3132_v12  ;;  %v3134_v63 = vmul.f32 1.442695, %v3124_v57  ;;  %v3125_v54 = vsub.f32 %v5234_v55, %v3109_v7  ;;  %2832 = vadd.xlane.f32.xlu1 %v2831_v61 }
 0xdcc   :  { %v3112_v56 = vpop.xlane.xlu0 %3111  ;;  %v2834_v25 = vsel %vm602_vm3, %v5305_v44, 0.0 }
 0xdcd   :  { %v5310_v23 = vpop.eup %4298  ;;  %4308 = vpow2.f32 %v3134_v63  ;;  %v3136_v38 = vmul.f32 1.442695, %v3125_v54  ;;  %v3126_v0 = vsub.f32 %v5240_v41, %v3112_v56  ;;  %2835 = vadd.xlane.f32.xlu0 %v2834_v25 }
 0xdce   :  { %v3115_v35 = vpop.xlane.xlu1 %3114  ;;  %v2837_v53 = vsel %vm602_vm3, %v5310_v23, 0.0 }
 0xdcf   :  { %v5315_v10 = vpop.eup %4300  ;;  %4310 = vpow2.f32 %v3136_v38  ;;  %v3138_v55 = vmul.f32 1.442695, %v3126_v0  ;;  %v3127_v36 = vsub.f32 %v5248_v14, %v3115_v35  ;;  %2838 = vadd.xlane.f32.xlu1 %v2837_v53 }
 0xdd0   :  { %v3118_v58 = vpop.xlane.xlu0 %3117  ;;  %v2840_v8 = vsel %vm602_vm3, %v5315_v10, 0.0 }
 0xdd1   :  { %v5320_v59 = vpop.eup %4302  ;;  %4312 = vpow2.f32 %v3138_v55  ;;  %v3140_v41 = vmul.f32 1.442695, %v3127_v36  ;;  %v3128_v21 = vsub.f32 %v5238_v30, %v3118_v58  ;;  %2841 = vadd.xlane.f32.xlu0 %v2840_v8  ;;  %v3555_v58 = vpack.c.bf16 %v4818_v6, %v4818_v6 }
 0xdd2   :  { %v3121_v26 = vpop.xlane.xlu1 %3120  ;;  %v2843_v17 = vsel %vm602_vm3, %v5320_v59, 0.0  ;;  %v3554_v8 = vpack.c.bf16 %v4814_v4, %v4814_v4  ;;  %v3559_v4 = vpack.c.bf16 %v4844_v52, %v4844_v52  ;;  %v3562_v6 = vpack.c.bf16 %v5048_v20, %v5048_v20 }
 0xdd3   :  { %v5325_v62 = vpop.eup %4304  ;;  %4314 = vpow2.f32 %v3140_v41  ;;  %v3142_v14 = vmul.f32 1.442695, %v3128_v21  ;;  %v3129_v1 = vsub.f32 %v5244_v32, %v3121_v26  ;;  %2844 = vadd.xlane.f32.xlu1 %v2843_v17  ;;  %v3556_v41 = vpack.c.bf16 %v4812_v3, %v4812_v3 }
 0xdd4   :  { %v3146_v12 = vsel %vm602_vm3, %v5325_v62, 0.0  ;;  %v3557_v21 = vpack.c.bf16 %v4816_v5, %v4816_v5  ;;  %v3558_v26 = vpack.c.bf16 %v4836_v48, %v4836_v48  ;;  %v3560_v3 = vpack.c.bf16 %v4832_v46, %v4832_v46 }
 0xdd5   :  { %v5330_v57 = vpop.eup %4306  ;;  %4316 = vpow2.f32 %v3142_v14  ;;  %v3144_v7 = vmul.f32 1.442695, %v3129_v1  ;;  %3147 = vadd.xlane.f32.xlu0 %v3146_v12  ;;  %v3561_v5 = vpack.c.bf16 %v4840_v50, %v4840_v50  ;;  %v3563_v48 = vpack.c.bf16 %v5052_v40, %v5052_v40 }
 0xdd6   :  { %v3149_v30 = vsel %vm602_vm3, %v5330_v57, 0.0  ;;  %v3564_v46 = vpack.c.bf16 %v5046_v39, %v5046_v39  ;;  %v3565_v50 = vpack.c.bf16 %v5050_v47, %v5050_v47  ;;  %v3566_v52 = vpack.c.bf16 %v5056_v27, %v5056_v27 }
 0xdd7   :  { %v5334_v61 = vpop.eup %4308  ;;  %4318 = vpow2.f32 %v3144_v7  ;;  %3150 = vadd.xlane.f32.xlu1 %v3149_v30  ;;  %v3567_v20 = vpack.c.bf16 %v5060_v45, %v5060_v45  ;;  %v3568_v39 = vpack.c.bf16 %v5054_v37, %v5054_v37  ;;  %v3569_v47 = vpack.c.bf16 %v5058_v60, %v5058_v60 }
 0xdd8   :  { %v3152_v63 = vsel %vm602_vm3, %v5334_v61, 0.0  ;;  %v3570_v40 = vpack.c.bf16 %v5064_v22, %v5064_v22  ;;  %v3571_v27 = vpack.c.bf16 %v5068_v15, %v5068_v15  ;;  %v3572_v37 = vpack.c.bf16 %v5062_v33, %v5062_v33 }
 0xdd9   :  { %v5338_v32 = vpop.eup %4310  ;;  %3153 = vadd.xlane.f32.xlu0 %v3152_v63  ;;  %v3573_v60 = vpack.c.bf16 %v5066_v13, %v5066_v13  ;;  %v3574_v45 = vpack.c.bf16 %v5072_v19, %v5072_v19  ;;  %v3575_v22 = vpack.c.bf16 %v5076_v51, %v5076_v51  ;;  %v3576_v33 = vpack.c.bf16 %v5070_v42, %v5070_v42 }
 0xdda   :  { %v3155_v54 = vsel %vm602_vm3, %v5338_v32, 0.0  ;;  %v3577_v13 = vpack.c.bf16 %v5074_v2, %v5074_v2  ;;  %v3586_v15 = vpack.c.bf16 %v5246_v24, %v5246_v24  ;;  %v3587_v19 = vpack.c.bf16 %v5252_v34, %v5252_v34  ;;  %v5578_v34 = vld [vmem:[#allocation7_spill] sm:$0xff] }
 0xddb   :  { %v5342_v56 = vpop.eup %4312  ;;  %3156 = vadd.xlane.f32.xlu1 %v3155_v54  ;;  %v3588_v42 = vpack.c.bf16 %v5242_v9, %v5242_v9  ;;  %v3589_v2 = vpack.c.bf16 %v5250_v28, %v5250_v28  ;;  %v3590_v51 = vpack.c.bf16 %v5256_v11, %v5256_v11  ;;  %v3591_v24 = vpack.c.bf16 %v5260_v18, %v5260_v18 }
 0xddc   :  { %v3158_v25 = vsel %vm602_vm3, %v5342_v56, 0.0  ;;  %v3592_v9 = vpack.c.bf16 %v5254_v43, %v5254_v43  ;;  %v3593_v28 = vpack.c.bf16 %v5578_v34, %v5578_v34 }
 0xddd   :  { %v5346_v38 = vpop.eup %4314  ;;  %3159 = vadd.xlane.f32.xlu0 %v3158_v25 }
 0xdde   :  { %v3161_v0 = vsel %vm602_vm3, %v5346_v38, 0.0 }
 0xddf   :  { %v5350_v35 = vpop.eup %4316  ;;  %3162 = vadd.xlane.f32.xlu1 %v3161_v0 }
 0xde0   :  { %v3164_v53 = vsel %vm602_vm3, %v5350_v35, 0.0 }
 0xde1   :  { %v5354_v55 = vpop.eup %4318  ;;  %3165 = vadd.xlane.f32.xlu0 %v3164_v53 }
 0xde2   :  { %v3167_v36 = vsel %vm602_vm3, %v5354_v55, 0.0 }
 0xde3   :  { %3168 = vadd.xlane.f32.xlu1 %v3167_v36 }
 0xdf4   :  { %1113 = vrot.lane.b32.xlu1 %v3555_v58, %s4376_s0 }
 0xdf7   :  { %1111 = vrot.lane.b32.xlu0 %v3554_v8, %s4376_s0 }
 0xdf8   :  { %1115 = vrot.lane.b32.xlu1 %v3556_v41, %s4376_s0 }
 0xdfb   :  { %1117 = vrot.lane.b32.xlu0 %v3557_v21, %s4376_s0 }
 0xdfc   :  { %1119 = vrot.lane.b32.xlu1 %v3558_v26, %s4376_s0 }
 0xdff   :  { %1121 = vrot.lane.b32.xlu0 %v3559_v4, %s4376_s0 }
 0xe00   :  { %1123 = vrot.lane.b32.xlu1 %v3560_v3, %s4376_s0 }
 0xe03   :  { %1125 = vrot.lane.b32.xlu0 %v3561_v5, %s4376_s0 }
 0xe04   :  { %1436 = vrot.lane.b32.xlu1 %v3562_v6, %s4377_s4 }
 0xe07   :  { %1438 = vrot.lane.b32.xlu0 %v3563_v48, %s4377_s4 }
 0xe08   :  { %1440 = vrot.lane.b32.xlu1 %v3564_v46, %s4377_s4  ;;  %v5580_v46 = vld [vmem:[#allocation5_spill] sm:$0xff] }
 0xe0b   :  { %1442 = vrot.lane.b32.xlu0 %v3565_v50, %s4377_s4 }
 0xe0c   :  { %1444 = vrot.lane.b32.xlu1 %v3566_v52, %s4377_s4 }
 0xe0f   :  { %1446 = vrot.lane.b32.xlu0 %v3567_v20, %s4377_s4 }
 0xe10   :  { %1448 = vrot.lane.b32.xlu1 %v3568_v39, %s4377_s4 }
 0xe13   :  { %1450 = vrot.lane.b32.xlu0 %v3569_v47, %s4377_s4 }
 0xe14   :  { %1761 = vrot.lane.b32.xlu1 %v3570_v40, %s4378_s5 }
 0xe17   :  { %1763 = vrot.lane.b32.xlu0 %v3571_v27, %s4378_s5 }
 0xe18   :  { %1765 = vrot.lane.b32.xlu1 %v3572_v37, %s4378_s5 }
 0xe1b   :  { %1767 = vrot.lane.b32.xlu0 %v3573_v60, %s4378_s5  ;;  %v3206_v60 = vsel %vm602_vm3, %v5580_v46, 0 }
 0xe1c   :  { %1769 = vrot.lane.b32.xlu1 %v3574_v45, %s4378_s5 }
 0xe1f   :  { %1771 = vrot.lane.b32.xlu0 %v3575_v22, %s4378_s5 }
 0xe20   :  { %1773 = vrot.lane.b32.xlu1 %v3576_v33, %s4378_s5 }
 0xe23   :  { %1775 = vrot.lane.b32.xlu0 %v3577_v13, %s4378_s5 }
 0xe24   :  { %2649 = vrot.lane.b32.xlu1 %v3586_v15, %s4376_s0 }
 0xe27   :  { %2651 = vrot.lane.b32.xlu0 %v3587_v19, %s4376_s0 }
 0xe28   :  { %2653 = vrot.lane.b32.xlu1 %v3588_v42, %s4376_s0 }
 0xe2b   :  { %2655 = vrot.lane.b32.xlu0 %v3589_v2, %s4376_s0 }
 0xe2c   :  { %2657 = vrot.lane.b32.xlu1 %v3590_v51, %s4376_s0 }
 0xe2f   :  { %2659 = vrot.lane.b32.xlu0 %v3591_v24, %s4376_s0 }
 0xe30   :  { %2661 = vrot.lane.b32.xlu1 %v3592_v9, %s4376_s0 }
 0xe33   :  { %2663 = vrot.lane.b32.xlu0 %v3593_v28, %s4376_s0 }
 0xe52   :  { %v2824_v11 = vpop.xlane.xlu0 %2823 }
 0xe53   :  { %4320 = vrcp.f32 %v2824_v11 }
 0xe54   :  { %v2827_v17 = vpop.xlane.xlu1 %2826 }
 0xe55   :  { %4322 = vrcp.f32 %v2827_v17 }
 0xe56   :  { %v2830_v14 = vpop.xlane.xlu0 %2829 }
 0xe57   :  { %4324 = vrcp.f32 %v2830_v14 }
 0xe58   :  { %v2833_v1 = vpop.xlane.xlu1 %2832 }
 0xe59   :  { %4326 = vrcp.f32 %v2833_v1 }
 0xe5a   :  { %v2836_v18 = vpop.xlane.xlu0 %2835 }
 0xe5b   :  { %4328 = vrcp.f32 %v2836_v18 }
 0xe5c   :  { %v2839_v43 = vpop.xlane.xlu1 %2838 }
 0xe5d   :  { %v4321_v12 = vpop.eup %4320  ;;  %4330 = vrcp.f32 %v2839_v43 }
 0xe5e   :  { %v2842_v7 = vpop.xlane.xlu0 %2841  ;;  %v2854_v54 = vmul.f32 %v4321_v12, %v5286_v29 }
 0xe5f   :  { %v4323_v30 = vpop.eup %4322  ;;  %4332 = vrcp.f32 %v2842_v7 }
 0xe60   :  { %v2845_v63 = vpop.xlane.xlu1 %2844  ;;  %v2855_v25 = vmul.f32 %v4323_v30, %v5290_v49  ;;  %v5579_v49 = vld [vmem:[#allocation6_spill] sm:$0xff] }
 0xe61   :  { %v4325_v0 = vpop.eup %4324  ;;  %4334 = vrcp.f32 %v2845_v63  ;;  %v3203_v5 = vsel %vm602_vm3, %v5579_v49, 0 }
 0xe62   :  { %v3148_v53 = vpop.xlane.xlu0 %3147  ;;  %v2862_v36 = vpack.c.bf16 %v2855_v25, %v2854_v54  ;;  %v2856_v8 = vmul.f32 %v4325_v0, %v5295_v16 }
 0xe63   :  { %v4327_v58 = vpop.eup %4326  ;;  %4336 = vrcp.f32 %v3148_v53 }
 0xe64   :  { %v2857_v41 = vmul.f32 %v4327_v58, %v5300_v31  ;;  %4016 = vmatprep.mubr.msk.bf16.mxu1 %vm602_vm3, %v2862_v36  ;;  %v3151_v21 = vpop.xlane.xlu1 %3150 }
 0xe65   :  { %v4329_v26 = vpop.eup %4328  ;;  %4338 = vrcp.f32 %v3151_v21 }
 0xe66   :  { %v2863_v4 = vpack.c.bf16 %v2857_v41, %v2856_v8  ;;  %v3154_v3 = vpop.xlane.xlu0 %3153  ;;  %v2858_v48 = vmul.f32 %v4329_v26, %v5305_v44 }
 0xe67   :  { %v4331_v29 = vpop.eup %4330  ;;  %4340 = vrcp.f32 %v3154_v3 }
 0xe68   :  { %4017 = vmatmul.mubr.msk.bf16.vlgmr.msra.gmra.mrb[96].mxu1 %vm602_vm3, %v2863_v4  ;;  %v3157_v6 = vpop.xlane.xlu1 %3156  ;;  %v2859_v16 = vmul.f32 %v4331_v29, %v5310_v23 }
 0xe69   :  { %v4333_v31 = vpop.eup %4332  ;;  %4037 = vmatpush3.bf16.xpose.msra.mxu1 %v3203_v5  ;;  %4342 = vrcp.f32 %v3157_v6 }
 0xe6a   :  { %4065 = vmatprep.subr.msk.bf16.mxu1 %vm602_vm3, %v5580_v46  ;;  %v3160_v50 = vpop.xlane.xlu0 %3159  ;;  %v2864_v52 = vpack.c.bf16 %v2859_v16, %v2858_v48  ;;  %v2860_v47 = vmul.f32 %v4333_v31, %v5315_v10 }
 0xe6b   :  { %v4335_v20 = vpop.eup %4334  ;;  %4344 = vrcp.f32 %v3160_v50 }
 0xe6c   :  { %4020 = vmatprep.mubr.msk.bf16.mxu1 %vm602_vm3, %v2864_v52  ;;  %v3163_v39 = vpop.xlane.xlu1 %3162  ;;  %v2861_v40 = vmul.f32 %v4335_v20, %v5320_v59 }
 0xe6d   :  { %v4337_v44 = vpop.eup %4336  ;;  %4346 = vrcp.f32 %v3163_v39 }
 0xe6e   :  { %v3166_v23 = vpop.xlane.xlu0 %3165  ;;  %v2865_v27 = vpack.c.bf16 %v2861_v40, %v2860_v47  ;;  %v3178_v22 = vmul.f32 %v4337_v44, %v5325_v62 }
 0xe6f   :  { %v4339_v37 = vpop.eup %4338  ;;  %4348 = vrcp.f32 %v3166_v23 }
 0xe70   :  { %4021 = vmatmul.mubr.msk.bf16.gmra.mrb[100].mxu1 %vm602_vm3, %v2865_v27  ;;  %v3169_v45 = vpop.xlane.xlu1 %3168  ;;  %v3179_v33 = vmul.f32 %v4339_v37, %v5330_v57 }
 0xe71   :  { %v4341_v10 = vpop.eup %4340  ;;  %4039 = vmatpush3.bf16.xpose.msra.mxu1 %v3206_v60  ;;  %4350 = vrcp.f32 %v3169_v45 }
 0xe72   :  { %v1112_v59 = vpop.permute.xlu0 %1111  ;;  %v3186_v13 = vpack.c.bf16 %v3179_v33, %v3178_v22  ;;  %v3180_v19 = vmul.f32 %v4341_v10, %v5334_v61 }
 0xe73   :  { %v4343_v15 = vpop.eup %4342  ;;  %1136 = vst.msk [vmem:[#allocation2] sm:$0xf] %vm1135_vm5, %v1112_v59 }
 0xe74   :  { %v3181_v42 = vmul.f32 %v4343_v15, %v5338_v32  ;;  %4040 = vmatprep.mubr.msk.bf16.mxu1 %vm602_vm3, %v3186_v13  ;;  %v1114_v2 = vpop.permute.xlu1 %1113 }
 0xe75   :  { %v4345_v51 = vpop.eup %4344  ;;  %1137 = vst.msk [vmem:[#allocation2 + $0x4] sm:$0xf] %vm1135_vm5, %v1114_v2 }
 0xe76   :  { %v3187_v62 = vpack.c.bf16 %v3181_v42, %v3180_v19  ;;  %v1118_v57 = vpop.permute.xlu0 %1117  ;;  %v3182_v34 = vmul.f32 %v4345_v51, %v5342_v56 }
 0xe77   :  { %v4347_v24 = vpop.eup %4346  ;;  %1139 = vst.msk [vmem:[#allocation2 + $0xc] sm:$0xf] %vm1135_vm5, %v1118_v57 }
 0xe78   :  { %4041 = vmatmul.mubr.msk.bf16.vlgmr.msra.gmra.mrb[104].mxu1 %vm602_vm3, %v3187_v62  ;;  %v1116_v9 = vpop.permute.xlu1 %1115  ;;  %v3183_v61 = vmul.f32 %v4347_v24, %v5346_v38 }
 0xe79   :  { %v4349_v28 = vpop.eup %4348  ;;  %1138 = vst.msk [vmem:[#allocation2 + $0x8] sm:$0xf] %vm1135_vm5, %v1116_v9 }
 0xe7a   :  { %v1122_v32 = vpop.permute.xlu0 %1121  ;;  %v3188_v11 = vpack.c.bf16 %v3183_v61, %v3182_v34  ;;  %v3184_v1 = vmul.f32 %v4349_v28, %v5350_v35 }
 0xe7b   :  { %v4351_v17 = vpop.eup %4350  ;;  %1141 = vst.msk [vmem:[#allocation2 + $0x14] sm:$0xf] %vm1135_vm5, %v1122_v32 }
 0xe7c   :  { %4044 = vmatprep.mubr.msk.bf16.mxu1 %vm602_vm3, %v3188_v11  ;;  %v1120_v14 = vpop.permute.xlu1 %1119  ;;  %v3185_v18 = vmul.f32 %v4351_v17, %v5354_v55 }
 0xe7d   :  { %1140 = vst.msk [vmem:[#allocation2 + $0x10] sm:$0xf] %vm1135_vm5, %v1120_v14 }
 0xe7e   :  { %v1126_v56 = vpop.permute.xlu0 %1125  ;;  %v3189_v43 = vpack.c.bf16 %v3185_v18, %v3184_v1 }
 0xe7f   :  { %1143 = vst.msk [vmem:[#allocation2 + $0x1c] sm:$0xf] %vm1135_vm5, %v1126_v56 }
 0xe80   :  { %4045 = vmatmul.mubr.msk.bf16.gmra.mrb[108].mxu1 %vm602_vm3, %v3189_v43  ;;  %v1124_v38 = vpop.permute.xlu1 %1123 }
 0xe81   :  { %1142 = vst.msk [vmem:[#allocation2 + $0x18] sm:$0xf] %vm1135_vm5, %v1124_v38 }
 0xe82   :  { %v1439_v12 = vpop.permute.xlu0 %1438 }
 0xe83   :  { %1462 = vst.msk [vmem:[#allocation2 + $0x4] sm:$0xf] %vm1460_vm6, %v1439_v12 }
 0xe84   :  { %v1437_v7 = vpop.permute.xlu1 %1436 }
 0xe85   :  { %1461 = vst.msk [vmem:[#allocation2] sm:$0xf] %vm1460_vm6, %v1437_v7 }
 0xe86   :  { %v1443_v35 = vpop.permute.xlu0 %1442 }
 0xe87   :  { %1464 = vst.msk [vmem:[#allocation2 + $0xc] sm:$0xf] %vm1460_vm6, %v1443_v35 }
 0xe88   :  { %v1441_v55 = vpop.permute.xlu1 %1440 }
 0xe89   :  { %1463 = vst.msk [vmem:[#allocation2 + $0x8] sm:$0xf] %vm1460_vm6, %v1441_v55 }
 0xe8a   :  { %v1447_v30 = vpop.permute.xlu0 %1446 }
 0xe8b   :  { %1466 = vst.msk [vmem:[#allocation2 + $0x14] sm:$0xf] %vm1460_vm6, %v1447_v30 }
 0xe8c   :  { %v1445_v63 = vpop.permute.xlu1 %1444 }
 0xe8d   :  { %1465 = vst.msk [vmem:[#allocation2 + $0x10] sm:$0xf] %vm1460_vm6, %v1445_v63 }
 0xe8e   :  { %v1451_v54 = vpop.permute.xlu0 %1450 }
 0xe8f   :  { %1468 = vst.msk [vmem:[#allocation2 + $0x1c] sm:$0xf] %vm1460_vm6, %v1451_v54 }
 0xe90   :  { %v1449_v25 = vpop.permute.xlu1 %1448 }
 0xe91   :  { %1467 = vst.msk [vmem:[#allocation2 + $0x18] sm:$0xf] %vm1460_vm6, %v1449_v25 }
 0xe92   :  { %v1764_v0 = vpop.permute.xlu0 %1763 }
 0xe93   :  { %1787 = vst.msk [vmem:[#allocation2 + $0x4] sm:$0xf] %vm1785_vm7, %v1764_v0 }
 0xe94   :  { %v1762_v53 = vpop.permute.xlu1 %1761 }
 0xe95   :  { %1786 = vst.msk [vmem:[#allocation2] sm:$0xf] %vm1785_vm7, %v1762_v53 }
 0xe96   :  { %v1768_v36 = vpop.permute.xlu0 %1767 }
 0xe97   :  { %1789 = vst.msk [vmem:[#allocation2 + $0xc] sm:$0xf] %vm1785_vm7, %v1768_v36 }
 0xe98   :  { %v1766_v58 = vpop.permute.xlu1 %1765 }
 0xe99   :  { %1788 = vst.msk [vmem:[#allocation2 + $0x8] sm:$0xf] %vm1785_vm7, %v1766_v58 }
 0xe9a   :  { %v1772_v8 = vpop.permute.xlu0 %1771 }
 0xe9b   :  { %1791 = vst.msk [vmem:[#allocation2 + $0x14] sm:$0xf] %vm1785_vm7, %v1772_v8 }
 0xe9c   :  { %v1770_v41 = vpop.permute.xlu1 %1769 }
 0xe9d   :  { %1790 = vst.msk [vmem:[#allocation2 + $0x10] sm:$0xf] %vm1785_vm7, %v1770_v41 }
 0xe9e   :  { %v1776_v21 = vpop.permute.xlu0 %1775 }
 0xe9f   :  { %1793 = vst.msk [vmem:[#allocation2 + $0x1c] sm:$0xf] %vm1785_vm7, %v1776_v21 }
 0xea0   :  { %v1774_v26 = vpop.permute.xlu1 %1773 }
 0xea1   :  { %1792 = vst.msk [vmem:[#allocation2 + $0x18] sm:$0xf] %vm1785_vm7, %v1774_v26 }
 0xea2   :  { %v2652_v4 = vpop.permute.xlu0 %2651 }
 0xea3   :  { %2674 = vst.msk [vmem:[#allocation2 + $0x24] sm:$0xf] %vm1135_vm5, %v2652_v4 }
 0xea4   :  { %v2650_v3 = vpop.permute.xlu1 %2649 }
 0xea5   :  { %2673 = vst.msk [vmem:[#allocation2 + $0x20] sm:$0xf] %vm1135_vm5, %v2650_v3 }
 0xea6   :  { %v2656_v29 = vpop.permute.xlu0 %2655 }
 0xea7   :  { %2676 = vst.msk [vmem:[#allocation2 + $0x2c] sm:$0xf] %vm1135_vm5, %v2656_v29 }
 0xea8   :  { %v2654_v49 = vpop.permute.xlu1 %2653 }
 0xea9   :  { %2675 = vst.msk [vmem:[#allocation2 + $0x28] sm:$0xf] %vm1135_vm5, %v2654_v49 }
 0xeaa   :  { %v2660_v5 = vpop.permute.xlu0 %2659 }
 0xeab   :  { %2678 = vst.msk [vmem:[#allocation2 + $0x34] sm:$0xf] %vm1135_vm5, %v2660_v5 }
 0xeac   :  { %v2658_v6 = vpop.permute.xlu1 %2657 }
 0xead   :  { %2677 = vst.msk [vmem:[#allocation2 + $0x30] sm:$0xf] %vm1135_vm5, %v2658_v6 }
 0xeae   :  { %v2664_v48 = vpop.permute.xlu0 %2663 }
 0xeaf   :  { %2680 = vst.msk [vmem:[#allocation2 + $0x3c] sm:$0xf] %vm1135_vm5, %v2664_v48 }
 0xeb0   :  { %v2662_v16 = vpop.permute.xlu1 %2661 }
 0xeb1   :  { %2679 = vst.msk [vmem:[#allocation2 + $0x38] sm:$0xf] %vm1135_vm5, %v2662_v16 }
 0xf3b   :  { %v4018_v31 = vpop.f32.mrb[96].mxu1 }
 0xf3c   :  { %v3596_v46 = vpack.c.bf16 %v4018_v31, %v4018_v31  ;;  %v2918_v50 = vpop.f32.mrb[97].mxu1 }
 0xf3d   :  { %v4019_v52 = vpop.f32.mrb[98].mxu1  ;;  %v3594_v47 = vpack.c.bf16 %v2918_v50, %v2918_v50 }
 0xf3e   :  { %v3597_v20 = vpack.c.bf16 %v4019_v52, %v4019_v52  ;;  %2977 = vrot.lane.b32.xlu1 %v3596_v46, %s4377_s4  ;;  %v2921_v39 = vpop.f32.mrb[99].mxu1 }
 0xf3f   :  { %v3595_v40 = vpack.c.bf16 %v2921_v39, %v2921_v39 }
 0xf40   :  { %2979 = vrot.lane.b32.xlu0 %v3597_v20, %s4377_s4 }
 0xf42   :  { %2973 = vrot.lane.b32.xlu1 %v3594_v47, %s4377_s4 }
 0xf43   :  { %v4022_v44 = vpop.f32.mrb[100].mxu1 }
 0xf44   :  { %v3600_v23 = vpack.c.bf16 %v4022_v44, %v4022_v44  ;;  %v2934_v27 = vpop.f32.mrb[101].mxu1  ;;  %2975 = vrot.lane.b32.xlu0 %v3595_v40, %s4377_s4 }
 0xf45   :  { %v4023_v37 = vpop.f32.mrb[102].mxu1  ;;  %v3598_v22 = vpack.c.bf16 %v2934_v27, %v2934_v27 }
 0xf46   :  { %v3601_v60 = vpack.c.bf16 %v4023_v37, %v4023_v37  ;;  %2985 = vrot.lane.b32.xlu1 %v3600_v23, %s4377_s4  ;;  %v2937_v45 = vpop.f32.mrb[103].mxu1 }
 0xf47   :  { %v3599_v33 = vpack.c.bf16 %v2937_v45, %v2937_v45 }
 0xf48   :  { %2987 = vrot.lane.b32.xlu0 %v3601_v60, %s4377_s4 }
 0xf4a   :  { %2981 = vrot.lane.b32.xlu1 %v3598_v22, %s4377_s4 }
 0xf4b   :  { %v4042_v10 = vpop.f32.mrb[104].mxu1 }
 0xf4c   :  { %v3604_v59 = vpack.c.bf16 %v4042_v10, %v4042_v10  ;;  %v3242_v13 = vpop.f32.mrb[105].mxu1  ;;  %2983 = vrot.lane.b32.xlu0 %v3599_v33, %s4377_s4 }
 0xf4d   :  { %v4043_v15 = vpop.f32.mrb[106].mxu1  ;;  %v3602_v2 = vpack.c.bf16 %v3242_v13, %v3242_v13 }
 0xf4e   :  { %v3605_v19 = vpack.c.bf16 %v4043_v15, %v4043_v15  ;;  %3301 = vrot.lane.b32.xlu1 %v3604_v59, %s4378_s5  ;;  %v3245_v42 = vpop.f32.mrb[107].mxu1 }
 0xf4f   :  { %v3603_v51 = vpack.c.bf16 %v3245_v42, %v3245_v42 }
 0xf50   :  { %3303 = vrot.lane.b32.xlu0 %v3605_v19, %s4378_s5 }
 0xf52   :  { %3297 = vrot.lane.b32.xlu1 %v3602_v2, %s4378_s5 }
 0xf53   :  { %v4046_v62 = vpop.f32.mrb[108].mxu1 }
 0xf54   :  { %v3258_v57 = vpop.f32.mrb[109].mxu1  ;;  %3299 = vrot.lane.b32.xlu0 %v3603_v51, %s4378_s5  ;;  %v3608_v28 = vpack.c.bf16 %v4046_v62, %v4046_v62 }
 0xf55   :  { %v3606_v24 = vpack.c.bf16 %v3258_v57, %v3258_v57  ;;  %v4047_v9 = vpop.f32.mrb[110].mxu1 }
 0xf56   :  { %v3261_v34 = vpop.f32.mrb[111].mxu1  ;;  %v3609_v32 = vpack.c.bf16 %v4047_v9, %v4047_v9 }
 0xf57   :  { %v3607_v61 = vpack.c.bf16 %v3261_v34, %v3261_v34  ;;  %3305 = vrot.lane.b32.xlu1 %v3606_v24, %s4378_s5 }
 0xf59   :  { %3307 = vrot.lane.b32.xlu0 %v3607_v61, %s4378_s5 }
 0xf5b   :  { %3309 = vrot.lane.b32.xlu1 %v3608_v28, %s4378_s5 }
 0xf5d   :  { %3311 = vrot.lane.b32.xlu0 %v3609_v32, %s4378_s5 }
 0xfb0   :  { %v2978_v11 = vpop.permute.xlu1 %2977 }
 0xfb1   :  { %2999 = vst.msk [vmem:[#allocation2 + $0x28] sm:$0xf] %vm1460_vm6, %v2978_v11 }
 0xfb2   :  { %v2980_v17 = vpop.permute.xlu0 %2979 }
 0xfb3   :  { %3000 = vst.msk [vmem:[#allocation2 + $0x2c] sm:$0xf] %vm1460_vm6, %v2980_v17 }
 0xfb4   :  { %v2974_v14 = vpop.permute.xlu1 %2973 }
 0xfb5   :  { %2997 = vst.msk [vmem:[#allocation2 + $0x20] sm:$0xf] %vm1460_vm6, %v2974_v14 }
 0xfb6   :  { %v2976_v1 = vpop.permute.xlu0 %2975 }
 0xfb7   :  { %2998 = vst.msk [vmem:[#allocation2 + $0x24] sm:$0xf] %vm1460_vm6, %v2976_v1 }
 0xfb8   :  { %v2986_v18 = vpop.permute.xlu1 %2985 }
 0xfb9   :  { %3003 = vst.msk [vmem:[#allocation2 + $0x38] sm:$0xf] %vm1460_vm6, %v2986_v18 }
 0xfba   :  { %v2988_v56 = vpop.permute.xlu0 %2987 }
 0xfbb   :  { %3004 = vst.msk [vmem:[#allocation2 + $0x3c] sm:$0xf] %vm1460_vm6, %v2988_v56 }
 0xfbc   :  { %v2982_v43 = vpop.permute.xlu1 %2981 }
 0xfbd   :  { %3001 = vst.msk [vmem:[#allocation2 + $0x30] sm:$0xf] %vm1460_vm6, %v2982_v43 }
 0xfbe   :  { %v2984_v38 = vpop.permute.xlu0 %2983 }
 0xfbf   :  { %3002 = vst.msk [vmem:[#allocation2 + $0x34] sm:$0xf] %vm1460_vm6, %v2984_v38 }
 0xfc0   :  { %v3302_v12 = vpop.permute.xlu1 %3301 }
 0xfc1   :  { %3323 = vst.msk [vmem:[#allocation2 + $0x28] sm:$0xf] %vm1785_vm7, %v3302_v12 }
 0xfc2   :  { %v3304_v7 = vpop.permute.xlu0 %3303 }
 0xfc3   :  { %3324 = vst.msk [vmem:[#allocation2 + $0x2c] sm:$0xf] %vm1785_vm7, %v3304_v7 }
 0xfc4   :  { %v3298_v35 = vpop.permute.xlu1 %3297 }
 0xfc5   :  { %3321 = vst.msk [vmem:[#allocation2 + $0x20] sm:$0xf] %vm1785_vm7, %v3298_v35 }
 0xfc6   :  { %v3300_v55 = vpop.permute.xlu0 %3299 }
 0xfc7   :  { %3322 = vst.msk [vmem:[#allocation2 + $0x24] sm:$0xf] %vm1785_vm7, %v3300_v55 }
 0xfc9   :  { %v3306_v30 = vpop.permute.xlu1 %3305 }
 0xfca   :  { %3325 = vst.msk [vmem:[#allocation2 + $0x30] sm:$0xf] %vm1785_vm7, %v3306_v30 }
 0xfcb   :  { %v3308_v63 = vpop.permute.xlu0 %3307 }
 0xfcc   :  { %3326 = vst.msk [vmem:[#allocation2 + $0x34] sm:$0xf] %vm1785_vm7, %v3308_v63 }
 0xfcd   :  { %v3310_v54 = vpop.permute.xlu1 %3309 }
 0xfce   :  { %3327 = vst.msk [vmem:[#allocation2 + $0x38] sm:$0xf] %vm1785_vm7, %v3310_v54 }
 0xfcf   :  { %v3312_v25 = vpop.permute.xlu0 %3311 }
 0xfd0   :  { %3328 = vst.msk [vmem:[#allocation2 + $0x3c] sm:$0xf] %vm1785_vm7, %v3312_v25 }
 0xfd1   :  { %4363 = shalt.err (!%p4360_p4)
}
 0xfd2   :  { %s4364_s11 = scalar_lea.hbm %s5564_s2, 1024 }
 0xfd3   :  { %p4365_p5 = scmp.ne.s32.totalorder %s5564_s2, %s4364_s11  ;;  %p4368_p6 = scmp.lt.u32.totalorder %s4364_s11, %s5564_s2 }
 0xfd5   :  { %p4370_p7 = pnand %p4368_p6, %p4365_p5 }
 0xfd7   :  { %4373 = shalt.err (!%p4370_p7)
}
 0xfd8   :  { %s4380_s16 = smov 4  }
 0xfd9   :  { %3340 = dma.vmem_to_hbm [thread:$0]  %s3335_s7, 1024, %s5564_s2, [#allocation3], %s4377_s4, %s4377_s4, %s4380_s16  }
 0xfda   :  { %4374 = dma.done.wait [#allocation3], 1024  }
 0xfdb   :  { %4375 = vsyncadd [#allocation3], 4294966272 }
 0xfdc   :  { %3344 = vsyncpa [#allocation3], 1 }

</bundles_post_ra>
